<compile_context>
chip_gen: v6e
topology: v6e:2x2x1
jax: 0.10.0
libtpu: 0.0.40
codegen_flags: <defaults>
</compile_context>

<pallas_src>
import functools

import jax
import jax.numpy as jnp
from jax import lax
from jax.experimental import pallas as pl
from jax.experimental.pallas import tpu as pltpu

_MIB = 1024 * 1024


# ------------------------------- helpers ------------------------------------


def _round_up(x, m):
    return ((x + m - 1) // m) * m


def _vmem_capacity_bytes():
    """Trace-time VMEM capacity query; conservative (v7x) fallback."""
    try:
        return int(pltpu.get_tpu_info().vmem_capacity_bytes)
    except Exception:
        return 64 * _MIB


def _is_dual_tc_chip():
    """Heuristic: does this chip have 2 TensorCores (v7x-class)?"""
    try:
        kind = jax.devices()[0].device_kind.lower()
        return ("v7" in kind) or ("tpu7" in kind)
    except Exception:
        return False


_BUFFERED1_OK = None


def _single_buffer_supported():
    """Probe whether pipeline_mode=pl.Buffered(1) lowers and runs correctly."""
    global _BUFFERED1_OK
    if _BUFFERED1_OK is None:
        try:
            def k(w_ref, x_ref, o_ref):
                o_ref[...] = x_ref[...] + w_ref[...]

            w = jnp.full((8, 128), 2.0, jnp.float32)
            xx = jnp.arange(16 * 128, dtype=jnp.float32).reshape(16, 128)
            out = pl.pallas_call(
                k,
                out_shape=jax.ShapeDtypeStruct((16, 128), jnp.float32),
                grid=(2,),
                in_specs=[
                    pl.BlockSpec((8, 128), lambda i: (0, 0),
                                 pipeline_mode=pl.Buffered(1)),
                    pl.BlockSpec((8, 128), lambda i: (i, 0)),
                ],
                out_specs=pl.BlockSpec((8, 128), lambda i: (i, 0)),
            )(w, xx)
            _BUFFERED1_OK = bool(jnp.allclose(out, xx + 2.0))
        except Exception:
            _BUFFERED1_OK = False
    return _BUFFERED1_OK


def _const_spec(shape):
    """BlockSpec for a grid-invariant (weight/bias) operand.

    The index_map is constant, so double-buffering would only duplicate
    resident weight VMEM; single-buffer when the runtime supports it.
    """
    if _single_buffer_supported():
        return pl.BlockSpec(shape, lambda b, t: (0, 0),
                            pipeline_mode=pl.Buffered(1))
    return pl.BlockSpec(shape, lambda b, t: (0, 0))


def _layer_footprint(b_blk, d_in_p, hp, ep, *, in_bytes, y_bytes, w_bytes,
                     weight_bufs, is_last):
    """(fixed_bytes, per_timestep_bytes) of one layer's VMEM working set."""
    fixed = weight_bufs * (d_in_p + hp) * 3 * hp * w_bytes     # W_ih + W_hh
    fixed += weight_bufs * 4 * hp * 4                          # folded biases
    fixed += b_blk * hp * 4                                    # h carry
    if is_last:
        fixed += weight_bufs * (hp * ep * w_bytes + ep * 4)    # W_lin + b_lin
        fixed += b_blk * hp * 4                                # pool acc
        fixed += 2 * b_blk * ep * 4                            # out block
    per_t = b_blk * (2 * d_in_p * in_bytes + 3 * hp * 4)       # x (dbl) + gi
    if not is_last:
        per_t += 2 * b_blk * hp * y_bytes                      # y (dbl buf)
    return fixed, per_t


# ----------------------------- Pallas kernels --------------------------------


def _gru_chunk_recurrence(x_ref, w_ih_ref, w_hh_ref, b_ref, b_hhn_ref,
                          gi_ref, h_ref, emit, *, hidden_p, unroll):
    """Run the GRU recurrence over one (t_tile, b_blk) chunk.

    x_ref   : (t_tile, b_blk, d_in_p)   VMEM (compute dtype)
    w_ih_ref: (d_in_p, 3*Hp)            VMEM (compute dtype, gate blocks)
    w_hh_ref: (Hp, 3*Hp)                VMEM (compute dtype)
    b_ref   : (1, 3*Hp)  fp32           (r/z: b_ih+b_hh, n: b_ih)
    b_hhn_ref:(1, Hp)    fp32           (b_hh of the n gate)
    gi_ref  : (t_tile*b_blk, 3*Hp) fp32 VMEM scratch
    h_ref   : (b_blk, Hp) fp32          VMEM scratch (hidden-state carry)
    """
    t_tile, b_blk, d_in_p = x_ref.shape
    hp = hidden_p
    cdt = w_ih_ref.dtype                      # MXU operand dtype (bf16 or f32)

    # Hoisted input-side GEMM for the whole chunk: one big MXU matmul,
    # fp32 accumulation.
    x_flat = x_ref[...].reshape(t_tile * b_blk, d_in_p).astype(cdt)
    gi_ref[...] = (jnp.dot(x_flat, w_ih_ref[...],
                           preferred_element_type=jnp.float32)
                   + b_ref[...])

    # Loop-invariant loads hoisted out of the serial time loop.
    w_hh = w_hh_ref[...]
    b_hhn = jnp.broadcast_to(b_hhn_ref[...], (b_blk, hp))

    def step(t, h):
        row = pl.multiple_of(t * b_blk, 8)
        gi_t = gi_ref[pl.ds(row, b_blk), :]                      # (b_blk, 3Hp)
        gh = jnp.dot(h.astype(cdt), w_hh, preferred_element_type=jnp.float32)
        # r and z share one fused sigmoid over the contiguous first 2*Hp lanes.
        rz = jax.nn.sigmoid(gi_t[:, 0:2 * hp] + gh[:, 0:2 * hp])
        r = rz[:, 0:hp]
        z = rz[:, hp:2 * hp]
        n = jnp.tanh(gi_t[:, 2 * hp:3 * hp] + r * (gh[:, 2 * hp:3 * hp] + b_hhn))
        h_new = n + z * (h - n)                                  # = (1-z)*n + z*h
        emit(t, h_new)
        return h_new

    h_ref[...] = lax.fori_loop(0, t_tile, step, h_ref[...], unroll=unroll)


def _gru_layer_kernel(x_ref, w_ih_ref, w_hh_ref, b_ref, b_hhn_ref,
                      y_ref, gi_ref, h_ref, *, hidden_p, unroll):
    """Non-final GRU layer: writes all hidden states y (t_tile, b_blk, Hp)."""
    @pl.when(pl.program_id(1) == 0)
    def _():
        h_ref[...] = jnp.zeros_like(h_ref)

    def emit(t, h_new):
        y_ref[t] = h_new.astype(y_ref.dtype)

    _gru_chunk_recurrence(x_ref, w_ih_ref, w_hh_ref, b_ref, b_hhn_ref,
                          gi_ref, h_ref, emit, hidden_p=hidden_p,
                          unroll=unroll)


def _gru_last_layer_kernel(x_ref, w_ih_ref, w_hh_ref, b_ref, b_hhn_ref,
                           w_lin_ref, b_lin_ref,
                           out_ref, gi_ref, h_ref, pool_ref,
                           *, hidden_p, unroll, pooling, seq_len):
    """Final GRU layer fused with (masked) time pooling and the output Linear."""
    t_tile = x_ref.shape[0]
    t0 = pl.program_id(1) * t_tile           # chunk start in (padded) time

    @pl.when(pl.program_id(1) == 0)
    def _():
        h_ref[...] = jnp.zeros_like(h_ref)
        if pooling == "max":
            # Padded Hp lanes are overwritten with exactly 0.0 at step 0 (which
            # is always a valid step) and padded W_lin rows are 0, so the -inf
            # init never reaches the sliced output.
            pool_ref[...] = jnp.full(pool_ref.shape, -jnp.inf, jnp.float32)
        else:
            pool_ref[...] = jnp.zeros_like(pool_ref)

    if pooling == "max":
        def emit(t, h_new):
            valid = (t0 + t) < seq_len        # mask padded trailing timesteps
            pool_ref[...] = jnp.maximum(pool_ref[...],
                                        jnp.where(valid, h_new, -jnp.inf))
    else:
        def emit(t, h_new):
            valid = (t0 + t) < seq_len
            pool_ref[...] = pool_ref[...] + jnp.where(valid, h_new, 0.0)

    _gru_chunk_recurrence(x_ref, w_ih_ref, w_hh_ref, b_ref, b_hhn_ref,
                          gi_ref, h_ref, emit, hidden_p=hidden_p,
                          unroll=unroll)

    @pl.when(pl.program_id(1) == pl.num_programs(1) - 1)
    def _():
        pooled = pool_ref[...]
        if pooling == "avg":
            pooled = pooled * (1.0 / float(seq_len))
        cdt = w_lin_ref.dtype
        out_ref[...] = (jnp.dot(pooled.astype(cdt), w_lin_ref[...],
                                preferred_element_type=jnp.float32)
                        + b_lin_ref[...])


# ------------------------------ pallas_call wrappers -------------------------


def _gru_layer(x_pad, w_ih_p, w_hh_p, b_p, b_hhn_p, *, b_blk, t_tile, unroll,
               y_dtype, vmem_limit):
    T, Bp, Dp = x_pad.shape
    Hp = w_hh_p.shape[0]
    nb, nt = Bp // b_blk, T // t_tile
    kernel = functools.partial(_gru_layer_kernel, hidden_p=Hp, unroll=unroll)
    return pl.pallas_call(
        kernel,
        out_shape=jax.ShapeDtypeStruct((T, Bp, Hp), y_dtype),
        grid_spec=pltpu.PrefetchScalarGridSpec(
            num_scalar_prefetch=0,
            grid=(nb, nt),
            in_specs=[
                pl.BlockSpec((t_tile, b_blk, Dp), lambda b, t: (t, b, 0)),
                _const_spec((Dp, 3 * Hp)),
                _const_spec((Hp, 3 * Hp)),
                _const_spec((1, 3 * Hp)),
                _const_spec((1, Hp)),
            ],
            out_specs=pl.BlockSpec((t_tile, b_blk, Hp), lambda b, t: (t, b, 0)),
            scratch_shapes=[
                pltpu.VMEM((t_tile * b_blk, 3 * Hp), jnp.float32),  # gi chunk
                pltpu.VMEM((b_blk, Hp), jnp.float32),               # h carry
            ],
        ),
        compiler_params=pltpu.CompilerParams(
            dimension_semantics=("parallel", "arbitrary"),
            vmem_limit_bytes=vmem_limit),
    )(x_pad, w_ih_p, w_hh_p, b_p, b_hhn_p)


def _gru_last_layer(x_pad, w_ih_p, w_hh_p, b_p, b_hhn_p, w_lin_p, b_lin_p,
                    *, pooling, b_blk, t_tile, unroll, seq_len, vmem_limit):
    T, Bp, Dp = x_pad.shape
    Hp = w_hh_p.shape[0]
    Ep = w_lin_p.shape[1]
    nb, nt = Bp // b_blk, T // t_tile
    kernel = functools.partial(_gru_last_layer_kernel, hidden_p=Hp,
                               unroll=unroll, pooling=pooling, seq_len=seq_len)
    return pl.pallas_call(
        kernel,
        out_shape=jax.ShapeDtypeStruct((Bp, Ep), jnp.float32),
        grid_spec=pltpu.PrefetchScalarGridSpec(
            num_scalar_prefetch=0,
            grid=(nb, nt),
            in_specs=[
                pl.BlockSpec((t_tile, b_blk, Dp), lambda b, t: (t, b, 0)),
                _const_spec((Dp, 3 * Hp)),
                _const_spec((Hp, 3 * Hp)),
                _const_spec((1, 3 * Hp)),
                _const_spec((1, Hp)),
                _const_spec((Hp, Ep)),
                _const_spec((1, Ep)),
            ],
            out_specs=pl.BlockSpec((b_blk, Ep), lambda b, t: (b, 0)),
            scratch_shapes=[
                pltpu.VMEM((t_tile * b_blk, 3 * Hp), jnp.float32),  # gi chunk
                pltpu.VMEM((b_blk, Hp), jnp.float32),               # h carry
                pltpu.VMEM((b_blk, Hp), jnp.float32),               # pool acc
            ],
        ),
        compiler_params=pltpu.CompilerParams(
            dimension_semantics=("parallel", "arbitrary"),
            vmem_limit_bytes=vmem_limit),
    )(x_pad, w_ih_p, w_hh_p, b_p, b_hhn_p, w_lin_p, b_lin_p)


# ----------------------------- parameter prep --------------------------------


def _prep_layer(layer, d_in, d_in_p, H, Hp, compute_dtype):
    """Pad gate-blocked weights to 128-lane multiples and pre-fold biases.

    Weights are stored in `compute_dtype` (bf16 for the MXU); biases stay fp32
    because they are added inside the fp32 accumulation.
    """
    w_ih_t = layer["w_ih_t"].astype(jnp.float32)     # (d_in, 3H)
    w_hh_t = layer["w_hh_t"].astype(jnp.float32)     # (H, 3H)
    b_ih = layer["b_ih"].reshape(-1).astype(jnp.float32)
    b_hh = layer["b_hh"].reshape(-1).astype(jnp.float32)

    def pad_gate_mat(w, rows, rows_p):
        out = jnp.zeros((rows_p, 3 * Hp), jnp.float32)
        for g in range(3):
            out = out.at[:rows, g * Hp:g * Hp + H].set(w[:, g * H:(g + 1) * H])
        return out.astype(compute_dtype)

    w_ih_p = pad_gate_mat(w_ih_t, d_in, d_in_p)
    w_hh_p = pad_gate_mat(w_hh_t, H, Hp)

    b_comb = jnp.zeros((1, 3 * Hp), jnp.float32)
    b_comb = b_comb.at[0, 0:H].set(b_ih[0:H] + b_hh[0:H])                # r
    b_comb = b_comb.at[0, Hp:Hp + H].set(b_ih[H:2 * H] + b_hh[H:2 * H])  # z
    b_comb = b_comb.at[0, 2 * Hp:2 * Hp + H].set(b_ih[2 * H:3 * H])      # n (ih)
    b_hhn = jnp.zeros((1, Hp), jnp.float32).at[0, :H].set(b_hh[2 * H:3 * H])
    return w_ih_p, w_hh_p, b_comb, b_hhn


# ------------------------------- forward pass --------------------------------


def stacked_gru_encoder(x_btd, params, pooling="max",
                        compute_dtype=jnp.bfloat16, max_t_tile=None):
    """x_btd: (B, T, input_size) -> (B, embedding_size)."""
    if pooling not in ("max", "avg"):
        raise ValueError("Invalid pooling type. Use 'max' or 'avg'.")
    B, T, D = x_btd.shape
    H = params["gru_layers"][0]["w_hh_t"].shape[0]
    E = params["w_lin_t"].shape[1]
    num_layers = len(params["gru_layers"])

    cdt = jnp.dtype(compute_dtype)
    sub = 16 if cdt == jnp.bfloat16 else 8       # sublane packing of cdt tiles
    w_bytes = cdt.itemsize
    in_bytes0 = w_bytes                          # first-layer x in compute dtype
    y_bytes = w_bytes                            # inter-layer activations

    Bp = _round_up(B, sub)
    Dp = _round_up(D, 128)
    Hp = _round_up(H, 128)
    Ep = _round_up(E, 128)

    # Batch block: <=128 rows; on dual-TensorCore chips (v7x) split a single
    # block in two so the 'parallel' batch axis can feed both cores.
    b_blk = Bp if Bp <= 128 else 128
    if _is_dual_tc_chip() and Bp // b_blk == 1 and Bp % (2 * sub) == 0:
        b_blk = Bp // 2
    Bp = _round_up(Bp, b_blk)

    # ---- time-chunk selection against a real, generation-aware VMEM budget --
    capacity = _vmem_capacity_bytes()
    budget = min(capacity // 3, 40 * _MIB)
    weight_bufs = 1 if _single_buffer_supported() else 2

    def max_t(d_in_p, is_last, in_b):
        fixed, per_t = _layer_footprint(
            b_blk, d_in_p, Hp, Ep, in_bytes=in_b, y_bytes=y_bytes,
            w_bytes=w_bytes, weight_bufs=weight_bufs, is_last=is_last)
        return max(1, (budget - fixed) // max(per_t, 1))

    cands = [max_t(Dp, num_layers == 1, in_bytes0)]
    if num_layers > 1:
        cands.append(max_t(Hp, False, y_bytes))
        cands.append(max_t(Hp, True, y_bytes))
    t_tile = int(min(min(cands), T))
    if max_t_tile is not None:
        t_tile = max(1, min(t_tile, int(max_t_tile)))
    n_chunks = -(-T // t_tile)
    t_tile = -(-T // n_chunks)                   # balance chunk sizes
    T_pad = n_chunks * t_tile                    # padded steps masked in-kernel
    unroll = True if t_tile <= 16 else 8

    x = jnp.transpose(x_btd, (1, 0, 2)).astype(jnp.float32)   # (T, B, D)
    x = jnp.pad(x, ((0, T_pad - T), (0, Bp - B), (0, Dp - D))).astype(cdt)

    out = None
    for li, layer in enumerate(params["gru_layers"]):
        d_in = D if li == 0 else H
        d_in_p = Dp if li == 0 else Hp
        in_b = in_bytes0 if li == 0 else y_bytes
        is_last = li == num_layers - 1
        w_ih_p, w_hh_p, b_p, b_hhn_p = _prep_layer(layer, d_in, d_in_p, H, Hp,
                                                   cdt)
        fixed, per_t = _layer_footprint(
            b_blk, d_in_p, Hp, Ep, in_bytes=in_b, y_bytes=y_bytes,
            w_bytes=w_bytes, weight_bufs=weight_bufs, is_last=is_last)
        vmem_limit = (fixed + per_t * t_tile) * 5 // 4 + 2 * _MIB
        vmem_limit = int(max(16 * _MIB,
                             min(vmem_limit, max(capacity - 4 * _MIB,
                                                 16 * _MIB))))
        if not is_last:
            x = _gru_layer(x, w_ih_p, w_hh_p, b_p, b_hhn_p,
                           b_blk=b_blk, t_tile=t_tile, unroll=unroll,
                           y_dtype=cdt, vmem_limit=vmem_limit)
            # dropout in eval mode == identity
        else:
            w_lin_p = jnp.zeros((Hp, Ep), jnp.float32).at[:H, :E].set(
                params["w_lin_t"].astype(jnp.float32)).astype(cdt)
            b_lin_p = jnp.zeros((1, Ep), jnp.float32).at[:, :E].set(
                params["b_lin"].astype(jnp.float32))
            out = _gru_last_layer(x, w_ih_p, w_hh_p, b_p, b_hhn_p,
                                  w_lin_p, b_lin_p, pooling=pooling,
                                  b_blk=b_blk, t_tile=t_tile, unroll=unroll,
                                  seq_len=T, vmem_limit=vmem_limit)
    return out[:B, :E]


# -------------------------- deterministic params ----------------------------


def init_params(key, input_size, hidden_size, num_layers, embedding_size):
    H = hidden_size
    k = 1.0 / jnp.sqrt(jnp.float32(H))
    params = {"gru_layers": []}
    for layer_idx in range(num_layers):
        d_in = input_size if layer_idx == 0 else hidden_size
        key, k1, k2, k3, k4 = jax.random.split(key, 5)
        # PyTorch stores weight_ih as (3H, d_in); kernel uses the transpose.
        w_ih = jax.random.uniform(k1, (3 * H, d_in), jnp.float32, -k, k)
        w_hh = jax.random.uniform(k2, (3 * H, H), jnp.float32, -k, k)
        b_ih = jax.random.uniform(k3, (3 * H,), jnp.float32, -k, k)
        b_hh = jax.random.uniform(k4, (3 * H,), jnp.float32, -k, k)
        params["gru_layers"].append({
            "w_ih_t": w_ih.T,                       # (d_in, 3H)
            "w_hh_t": w_hh.T,                       # (H, 3H)
            "b_ih": b_ih.reshape(1, 3 * H),
            "b_hh": b_hh.reshape(1, 3 * H),
        })
    key, k5, k6 = jax.random.split(key, 3)
    kl = 1.0 / jnp.sqrt(jnp.float32(H))
    w_lin = jax.random.uniform(k5, (embedding_size, H), jnp.float32, -kl, kl)
    b_lin = jax.random.uniform(k6, (embedding_size,), jnp.float32, -kl, kl)
    params["w_lin_t"] = w_lin.T                     # (H, E)
    params["b_lin"] = b_lin.reshape(1, embedding_size)
    return params


# ----------------------------- pure-JAX reference ---------------------------


def reference_forward(x_btd, params, pooling="max"):
    B = x_btd.shape[0]
    x = x_btd
    for layer in params["gru_layers"]:
        H = layer["w_hh_t"].shape[0]
        w_ih_t, w_hh_t = layer["w_ih_t"], layer["w_hh_t"]
        b_ih, b_hh = layer["b_ih"][0], layer["b_hh"][0]

        def step(h, x_t):
            gi = x_t @ w_ih_t + b_ih
            gh = h @ w_hh_t + b_hh
            r = jax.nn.sigmoid(gi[:, :H] + gh[:, :H])
            z = jax.nn.sigmoid(gi[:, H:2 * H] + gh[:, H:2 * H])
            n = jnp.tanh(gi[:, 2 * H:] + r * gh[:, 2 * H:])
            h_new = (1.0 - z) * n + z * h
            return h_new, h_new

        h0 = jnp.zeros((B, H), jnp.float32)
        _, ys = lax.scan(step, h0, jnp.transpose(x, (1, 0, 2)))
        x = jnp.transpose(ys, (1, 0, 2))
    if pooling == "max":
        pooled = jnp.max(x, axis=1)
    else:
        pooled = jnp.mean(x, axis=1)
    return pooled @ params["w_lin_t"] + params["b_lin"]


# ---------------------------------- main -------------------------------------


if __name__ == "__main__":
    input_size, hidden_size, num_layers, embedding_size = 16, 32, 2, 24

    key = jax.random.PRNGKey(0)
    key, xk1, xk2 = jax.random.split(key, 3)
    params = init_params(key, input_size, hidden_size, num_layers,
                         embedding_size)

    # Case 1: B=2, T=8 — single time chunk; exact fp32 mode (tight tolerance)
    # and mixed-precision bf16 mode (loosened tolerance, as the bf16 weights /
    # activations change rounding at the ~1e-3 level).
    x1 = jax.random.normal(xk1, (2, 8, input_size), jnp.float32)
    for compute_dtype, tol in ((jnp.float32, 1e-4), (jnp.bfloat16, 5e-2)):
        for pooling in ("max", "avg"):
            out = stacked_gru_encoder(x1, params, pooling,
                                      compute_dtype=compute_dtype)
            out = jax.block_until_ready(out)
            assert out.shape == (2, embedding_size)
            ref = reference_forward(x1, params, pooling)
            err = float(jnp.max(jnp.abs(out - ref)))
            assert jnp.allclose(out, ref, atol=tol, rtol=tol), (
                f"{pooling}/{jnp.dtype(compute_dtype).name} mismatch: "
                f"max abs err {err}")

    # Case 2: B=2, T=11 with a forced small time chunk — exercises the
    # multi-chunk hidden-state carry and the masked padded-timestep pooling.
    x2 = jax.random.normal(xk2, (2, 11, input_size), jnp.float32)
    for pooling in ("max", "avg"):
        out = stacked_gru_encoder(x2, params, pooling,
                                  compute_dtype=jnp.float32, max_t_tile=4)
        out = jax.block_until_ready(out)
        assert out.shape == (2, embedding_size)
        ref = reference_forward(x2, params, pooling)
        err = float(jnp.max(jnp.abs(out - ref)))
        assert jnp.allclose(out, ref, atol=1e-4, rtol=1e-4), (
            f"{pooling}/chunked mismatch: max abs err {err}")

    print("KERNEL_OK")
</pallas_src>

<mosaic_0001>
module attributes {stable_mosaic.version = 11 : i64} {
  func.func @k(%arg0: i32, %arg1: memref<8x128xf32, #tpu.memory_space<vmem>>, %arg2: memref<8x128xf32, #tpu.memory_space<vmem>>, %arg3: memref<8x128xf32, #tpu.memory_space<vmem>>) attributes {dimension_semantics = [#tpu.dimension_semantics<arbitrary>], iteration_bounds = array<i64: 2>, scalar_prefetch = 0 : i64, scratch_operands = 0 : i64, tpu.core_type = #tpu.core_type<tc>, window_params = [{pipeline_mode = #tpu.pipeline_mode<synchronous>, transform_indices = @transform_0, window_bounds = array<i64: 8, 128>}, {transform_indices = @transform_1, window_bounds = array<i64: 8, 128>}, {transform_indices = @transform_2, window_bounds = array<i64: 8, 128>}]} {
    %c0 = arith.constant 0 : index
    %c0_0 = arith.constant 0 : index
    %0 = vector.load %arg2[%c0, %c0_0] : memref<8x128xf32, #tpu.memory_space<vmem>>, vector<8x128xf32>
    %c0_1 = arith.constant 0 : index
    %c0_2 = arith.constant 0 : index
    %1 = vector.load %arg1[%c0_1, %c0_2] : memref<8x128xf32, #tpu.memory_space<vmem>>, vector<8x128xf32>
    %2 = arith.addf %0, %1 : vector<8x128xf32>
    %c0_3 = arith.constant 0 : index
    %c0_4 = arith.constant 0 : index
    %3 = vector.load %arg3[%c0_3, %c0_4] : memref<8x128xf32, #tpu.memory_space<vmem>>, vector<8x128xf32>
    tpu.vector_store %arg3[%c0_3, %c0_4], %2 {strides = array<i32>} : memref<8x128xf32, #tpu.memory_space<vmem>>, vector<8x128xf32>,
    return
  }
  func.func @transform_0(%arg0: i32) -> (i32, i32) {
    %c0_i32 = arith.constant 0 : i32
    %c0_i32_0 = arith.constant 0 : i32
    %c0_i32_1 = arith.constant 0 : i32
    return %c0_i32, %c0_i32_0 : i32, i32
  }
  func.func @transform_1(%arg0: i32) -> (i32, i32) {
    %c0_i32 = arith.constant 0 : i32
    %c0_i32_0 = arith.constant 0 : i32
    return %arg0, %c0_i32 : i32, i32
  }
  func.func @transform_2(%arg0: i32) -> (i32, i32) {
    %c0_i32 = arith.constant 0 : i32
    %c0_i32_0 = arith.constant 0 : i32
    return %arg0, %c0_i32 : i32, i32
  }
}

module attributes {stable_mosaic.version = 11 : i64} {
  func.func @_gru_layer_kernel(%arg0: i32, %arg1: i32, %arg2: memref<8x8x128xf32, #tpu.memory_space<vmem>>, %arg3: memref<128x384xf32, #tpu.memory_space<vmem>>, %arg4: memref<128x384xf32, #tpu.memory_space<vmem>>, %arg5: memref<1x384xf32, #tpu.memory_space<vmem>>, %arg6: memref<1x128xf32, #tpu.memory_space<vmem>>, %arg7: memref<8x8x128xf32, #tpu.memory_space<vmem>>, %arg8: memref<64x384xf32, #tpu.memory_space<vmem>>, %arg9: memref<8x128xf32, #tpu.memory_space<vmem>>) attributes {dimension_semantics = [#tpu.dimension_semantics<parallel>, #tpu.dimension_semantics<arbitrary>], iteration_bounds = array<i64: 1, 1>, scalar_prefetch = 0 : i64, scratch_operands = 2 : i64, tpu.core_type = #tpu.core_type<tc>, window_params = [{transform_indices = @transform_0, window_bounds = array<i64: 8, 8, 128>}, {pipeline_mode = #tpu.pipeline_mode<synchronous>, transform_indices = @transform_1, window_bounds = array<i64: 128, 384>}, {pipeline_mode = #tpu.pipeline_mode<synchronous>, transform_indices = @transform_2, window_bounds = array<i64: 128, 384>}, {pipeline_mode = #tpu.pipeline_mode<synchronous>, transform_indices = @transform_3, window_bounds = array<i64: 1, 384>}, {pipeline_mode = #tpu.pipeline_mode<synchronous>, transform_indices = @transform_4, window_bounds = array<i64: 1, 128>}, {transform_indices = @transform_5, window_bounds = array<i64: 8, 8, 128>}]} {
    %c0_i32 = arith.constant 0 : i32
    %0 = arith.cmpi eq, %arg1, %c0_i32 : i32
    %1 = arith.extui %0 : i1 to i32
    %c0_i32_0 = arith.constant 0 : i32
    %2 = arith.cmpi ne, %1, %c0_i32_0 : i32
    scf.if %2 {
      %cst_66 = arith.constant 0.000000e+00 : f32
      %241 = vector.broadcast %cst_66 : f32 to vector<8x128xf32>
      %c0_67 = arith.constant 0 : index
      %c0_68 = arith.constant 0 : index
      %242 = vector.load %arg9[%c0_67, %c0_68] : memref<8x128xf32, #tpu.memory_space<vmem>>, vector<8x128xf32>
      tpu.vector_store %arg9[%c0_67, %c0_68], %241 {strides = array<i32>} : memref<8x128xf32, #tpu.memory_space<vmem>>, vector<8x128xf32>,
    } else {
    }
    %c0 = arith.constant 0 : index
    %c0_1 = arith.constant 0 : index
    %c0_2 = arith.constant 0 : index
    %3 = vector.load %arg2[%c0, %c0_1, %c0_2] : memref<8x8x128xf32, #tpu.memory_space<vmem>>, vector<8x8x128xf32>
    %4 = vector.shape_cast %3 : vector<8x8x128xf32> to vector<64x128xf32>
    %c0_3 = arith.constant 0 : index
    %c0_4 = arith.constant 0 : index
    %5 = vector.load %arg3[%c0_3, %c0_4] : memref<128x384xf32, #tpu.memory_space<vmem>>, vector<128x384xf32>
    %cst = arith.constant dense<0.000000e+00> : vector<64x384xf32>
    %6 = tpu.matmul %4, %5, %cst {dimension_numbers = #tpu.dot_dimension_numbers<[1], [0], [0], [1], [0, 0, 1, 1], [], []>} : vector<64x128xf32>, vector<128x384xf32>, vector<64x384xf32> -> vector<64x384xf32>
    %c0_5 = arith.constant 0 : index
    %c0_6 = arith.constant 0 : index
    %7 = vector.load %arg5[%c0_5, %c0_6] : memref<1x384xf32, #tpu.memory_space<vmem>>, vector<1x384xf32>
    %8 = vector.broadcast %7 : vector<1x384xf32> to vector<64x384xf32>
    %9 = arith.addf %6, %8 : vector<64x384xf32>
    %c0_7 = arith.constant 0 : index
    %c0_8 = arith.constant 0 : index
    %10 = vector.load %arg8[%c0_7, %c0_8] : memref<64x384xf32, #tpu.memory_space<vmem>>, vector<64x384xf32>
    tpu.vector_store %arg8[%c0_7, %c0_8], %9 {strides = array<i32>} : memref<64x384xf32, #tpu.memory_space<vmem>>, vector<64x384xf32>,
    %c0_9 = arith.constant 0 : index
    %c0_10 = arith.constant 0 : index
    %11 = vector.load %arg4[%c0_9, %c0_10] : memref<128x384xf32, #tpu.memory_space<vmem>>, vector<128x384xf32>
    %c0_11 = arith.constant 0 : index
    %c0_12 = arith.constant 0 : index
    %12 = vector.load %arg6[%c0_11, %c0_12] : memref<1x128xf32, #tpu.memory_space<vmem>>, vector<1x128xf32>
    %13 = vector.shape_cast %12 : vector<1x128xf32> to vector<1x128xf32>
    %14 = vector.broadcast %13 : vector<1x128xf32> to vector<8x128xf32>
    %c0_13 = arith.constant 0 : index
    %c0_14 = arith.constant 0 : index
    %15 = vector.load %arg9[%c0_13, %c0_14] : memref<8x128xf32, #tpu.memory_space<vmem>>, vector<8x128xf32>
    %c0_i32_15 = arith.constant 0 : i32
    %c8_i32 = arith.constant 8 : i32
    %16 = arith.muli %c0_i32_15, %c8_i32 : i32
    %17 = tpu.assume_multiple %16, 8 : i32
    %18 = arith.index_cast %17 : i32 to index
    %c0_16 = arith.constant 0 : index
    %19 = vector.load %arg8[%18, %c0_16] : memref<64x384xf32, #tpu.memory_space<vmem>>, vector<8x384xf32>
    %cst_17 = arith.constant dense<0.000000e+00> : vector<8x384xf32>
    %20 = tpu.matmul %15, %11, %cst_17 {dimension_numbers = #tpu.dot_dimension_numbers<[1], [0], [0], [1], [0, 0, 1, 1], [], []>} : vector<8x128xf32>, vector<128x384xf32>, vector<8x384xf32> -> vector<8x384xf32>
    %21 = vector.extract_strided_slice %19 {offsets = [0, 0], sizes = [8, 256], strides = [1, 1]} : vector<8x384xf32> to vector<8x256xf32>
    %22 = vector.extract_strided_slice %20 {offsets = [0, 0], sizes = [8, 256], strides = [1, 1]} : vector<8x384xf32> to vector<8x256xf32>
    %23 = arith.addf %21, %22 : vector<8x256xf32>
    %24 = arith.negf %23 : vector<8x256xf32>
    %25 = math.exp %24 : vector<8x256xf32>
    %cst_18 = arith.constant 1.000000e+00 : f32
    %26 = vector.broadcast %cst_18 : f32 to vector<8x256xf32>
    %27 = arith.addf %26, %25 : vector<8x256xf32>
    %28 = arith.divf %26, %27 : vector<8x256xf32>
    %29 = vector.extract_strided_slice %28 {offsets = [0, 0], sizes = [8, 128], strides = [1, 1]} : vector<8x256xf32> to vector<8x128xf32>
    %30 = vector.extract_strided_slice %28 {offsets = [0, 128], sizes = [8, 128], strides = [1, 1]} : vector<8x256xf32> to vector<8x128xf32>
    %31 = vector.extract_strided_slice %19 {offsets = [0, 256], sizes = [8, 128], strides = [1, 1]} : vector<8x384xf32> to vector<8x128xf32>
    %32 = vector.extract_strided_slice %20 {offsets = [0, 256], sizes = [8, 128], strides = [1, 1]} : vector<8x384xf32> to vector<8x128xf32>
    %33 = arith.addf %32, %14 : vector<8x128xf32>
    %34 = arith.mulf %29, %33 : vector<8x128xf32>
    %35 = arith.addf %31, %34 : vector<8x128xf32>
    %36 = math.tanh %35 : vector<8x128xf32>
    %37 = arith.subf %15, %36 : vector<8x128xf32>
    %38 = arith.mulf %30, %37 : vector<8x128xf32>
    %39 = arith.addf %36, %38 : vector<8x128xf32>
    %40 = arith.index_cast %c0_i32_15 : i32 to index
    %c0_19 = arith.constant 0 : index
    %c0_20 = arith.constant 0 : index
    %41 = vector.load %arg7[%40, %c0_19, %c0_20] : memref<8x8x128xf32, #tpu.memory_space<vmem>>, vector<1x8x128xf32>
    %42 = vector.shape_cast %41 : vector<1x8x128xf32> to vector<8x128xf32>
    %43 = vector.shape_cast %39 : vector<8x128xf32> to vector<1x8x128xf32>
    tpu.vector_store %arg7[%40, %c0_19, %c0_20], %43 {strides = array<i32>} : memref<8x8x128xf32, #tpu.memory_space<vmem>>, vector<1x8x128xf32>,
    %c1_i32 = arith.constant 1 : i32
    %c8_i32_21 = arith.constant 8 : i32
    %44 = arith.muli %c1_i32, %c8_i32_21 : i32
    %45 = tpu.assume_multiple %44, 8 : i32
    %46 = arith.index_cast %45 : i32 to index
    %c0_22 = arith.constant 0 : index
    %47 = vector.load %arg8[%46, %c0_22] : memref<64x384xf32, #tpu.memory_space<vmem>>, vector<8x384xf32>
    %cst_23 = arith.constant dense<0.000000e+00> : vector<8x384xf32>
    %48 = tpu.matmul %39, %11, %cst_23 {dimension_numbers = #tpu.dot_dimension_numbers<[1], [0], [0], [1], [0, 0, 1, 1], [], []>} : vector<8x128xf32>, vector<128x384xf32>, vector<8x384xf32> -> vector<8x384xf32>
    %49 = vector.extract_strided_slice %47 {offsets = [0, 0], sizes = [8, 256], strides = [1, 1]} : vector<8x384xf32> to vector<8x256xf32>
    %50 = vector.extract_strided_slice %48 {offsets = [0, 0], sizes = [8, 256], strides = [1, 1]} : vector<8x384xf32> to vector<8x256xf32>
    %51 = arith.addf %49, %50 : vector<8x256xf32>
    %52 = arith.negf %51 : vector<8x256xf32>
    %53 = math.exp %52 : vector<8x256xf32>
    %cst_24 = arith.constant 1.000000e+00 : f32
    %54 = vector.broadcast %cst_24 : f32 to vector<8x256xf32>
    %55 = arith.addf %54, %53 : vector<8x256xf32>
    %56 = arith.divf %54, %55 : vector<8x256xf32>
    %57 = vector.extract_strided_slice %56 {offsets = [0, 0], sizes = [8, 128], strides = [1, 1]} : vector<8x256xf32> to vector<8x128xf32>
    %58 = vector.extract_strided_slice %56 {offsets = [0, 128], sizes = [8, 128], strides = [1, 1]} : vector<8x256xf32> to vector<8x128xf32>
    %59 = vector.extract_strided_slice %47 {offsets = [0, 256], sizes = [8, 128], strides = [1, 1]} : vector<8x384xf32> to vector<8x128xf32>
    %60 = vector.extract_strided_slice %48 {offsets = [0, 256], sizes = [8, 128], strides = [1, 1]} : vector<8x384xf32> to vector<8x128xf32>
    %61 = arith.addf %60, %14 : vector<8x128xf32>
    %62 = arith.mulf %57, %61 : vector<8x128xf32>
    %63 = arith.addf %59, %62 : vector<8x128xf32>
    %64 = math.tanh %63 : vector<8x128xf32>
    %65 = arith.subf %39, %64 : vector<8x128xf32>
    %66 = arith.mulf %58, %65 : vector<8x128xf32>
    %67 = arith.addf %64, %66 : vector<8x128xf32>
    %68 = arith.index_cast %c1_i32 : i32 to index
    %c0_25 = arith.constant 0 : index
    %c0_26 = arith.constant 0 : index
    %69 = vector.load %arg7[%68, %c0_25, %c0_26] : memref<8x8x128xf32, #tpu.memory_space<vmem>>, vector<1x8x128xf32>
    %70 = vector.shape_cast %69 : vector<1x8x128xf32> to vector<8x128xf32>
    %71 = vector.shape_cast %67 : vector<8x128xf32> to vector<1x8x128xf32>
    tpu.vector_store %arg7[%68, %c0_25, %c0_26], %71 {strides = array<i32>} : memref<8x8x128xf32, #tpu.memory_space<vmem>>, vector<1x8x128xf32>,
    %c2_i32 = arith.constant 2 : i32
    %c8_i32_27 = arith.constant 8 : i32
    %72 = arith.muli %c2_i32, %c8_i32_27 : i32
    %73 = tpu.assume_multiple %72, 8 : i32
    %74 = arith.index_cast %73 : i32 to index
    %c0_28 = arith.constant 0 : index
    %75 = vector.load %arg8[%74, %c0_28] : memref<64x384xf32, #tpu.memory_space<vmem>>, vector<8x384xf32>
    %cst_29 = arith.constant dense<0.000000e+00> : vector<8x384xf32>
    %76 = tpu.matmul %67, %11, %cst_29 {dimension_numbers = #tpu.dot_dimension_numbers<[1], [0], [0], [1], [0, 0, 1, 1], [], []>} : vector<8x128xf32>, vector<128x384xf32>, vector<8x384xf32> -> vector<8x384xf32>
    %77 = vector.extract_strided_slice %75 {offsets = [0, 0], sizes = [8, 256], strides = [1, 1]} : vector<8x384xf32> to vector<8x256xf32>
    %78 = vector.extract_strided_slice %76 {offsets = [0, 0], sizes = [8, 256], strides = [1, 1]} : vector<8x384xf32> to vector<8x256xf32>
    %79 = arith.addf %77, %78 : vector<8x256xf32>
    %80 = arith.negf %79 : vector<8x256xf32>
    %81 = math.exp %80 : vector<8x256xf32>
    %cst_30 = arith.constant 1.000000e+00 : f32
    %82 = vector.broadcast %cst_30 : f32 to vector<8x256xf32>
    %83 = arith.addf %82, %81 : vector<8x256xf32>
    %84 = arith.divf %82, %83 : vector<8x256xf32>
    %85 = vector.extract_strided_slice %84 {offsets = [0, 0], sizes = [8, 128], strides = [1, 1]} : vector<8x256xf32> to vector<8x128xf32>
    %86 = vector.extract_strided_slice %84 {offsets = [0, 128], sizes = [8, 128], strides = [1, 1]} : vector<8x256xf32> to vector<8x128xf32>
    %87 = vector.extract_strided_slice %75 {offsets = [0, 256], sizes = [8, 128], strides = [1, 1]} : vector<8x384xf32> to vector<8x128xf32>
    %88 = vector.extract_strided_slice %76 {offsets = [0, 256], sizes = [8, 128], strides = [1, 1]} : vector<8x384xf32> to vector<8x128xf32>
    %89 = arith.addf %88, %14 : vector<8x128xf32>
    %90 = arith.mulf %85, %89 : vector<8x128xf32>
    %91 = arith.addf %87, %90 : vector<8x128xf32>
    %92 = math.tanh %91 : vector<8x128xf32>
    %93 = arith.subf %67, %92 : vector<8x128xf32>
    %94 = arith.mulf %86, %93 : vector<8x128xf32>
    %95 = arith.addf %92, %94 : vector<8x128xf32>
    %96 = arith.index_cast %c2_i32 : i32 to index
    %c0_31 = arith.constant 0 : index
    %c0_32 = arith.constant 0 : index
    %97 = vector.load %arg7[%96, %c0_31, %c0_32] : memref<8x8x128xf32, #tpu.memory_space<vmem>>, vector<1x8x128xf32>
    %98 = vector.shape_cast %97 : vector<1x8x128xf32> to vector<8x128xf32>
    %99 = vector.shape_cast %95 : vector<8x128xf32> to vector<1x8x128xf32>
    tpu.vector_store %arg7[%96, %c0_31, %c0_32], %99 {strides = array<i32>} : memref<8x8x128xf32, #tpu.memory_space<vmem>>, vector<1x8x128xf32>,
    %c3_i32 = arith.constant 3 : i32
    %c8_i32_33 = arith.constant 8 : i32
    %100 = arith.muli %c3_i32, %c8_i32_33 : i32
    %101 = tpu.assume_multiple %100, 8 : i32
    %102 = arith.index_cast %101 : i32 to index
    %c0_34 = arith.constant 0 : index
    %103 = vector.load %arg8[%102, %c0_34] : memref<64x384xf32, #tpu.memory_space<vmem>>, vector<8x384xf32>
    %cst_35 = arith.constant dense<0.000000e+00> : vector<8x384xf32>
    %104 = tpu.matmul %95, %11, %cst_35 {dimension_numbers = #tpu.dot_dimension_numbers<[1], [0], [0], [1], [0, 0, 1, 1], [], []>} : vector<8x128xf32>, vector<128x384xf32>, vector<8x384xf32> -> vector<8x384xf32>
    %105 = vector.extract_strided_slice %103 {offsets = [0, 0], sizes = [8, 256], strides = [1, 1]} : vector<8x384xf32> to vector<8x256xf32>
    %106 = vector.extract_strided_slice %104 {offsets = [0, 0], sizes = [8, 256], strides = [1, 1]} : vector<8x384xf32> to vector<8x256xf32>
    %107 = arith.addf %105, %106 : vector<8x256xf32>
    %108 = arith.negf %107 : vector<8x256xf32>
    %109 = math.exp %108 : vector<8x256xf32>
    %cst_36 = arith.constant 1.000000e+00 : f32
    %110 = vector.broadcast %cst_36 : f32 to vector<8x256xf32>
    %111 = arith.addf %110, %109 : vector<8x256xf32>
    %112 = arith.divf %110, %111 : vector<8x256xf32>
    %113 = vector.extract_strided_slice %112 {offsets = [0, 0], sizes = [8, 128], strides = [1, 1]} : vector<8x256xf32> to vector<8x128xf32>
    %114 = vector.extract_strided_slice %112 {offsets = [0, 128], sizes = [8, 128], strides = [1, 1]} : vector<8x256xf32> to vector<8x128xf32>
    %115 = vector.extract_strided_slice %103 {offsets = [0, 256], sizes = [8, 128], strides = [1, 1]} : vector<8x384xf32> to vector<8x128xf32>
    %116 = vector.extract_strided_slice %104 {offsets = [0, 256], sizes = [8, 128], strides = [1, 1]} : vector<8x384xf32> to vector<8x128xf32>
    %117 = arith.addf %116, %14 : vector<8x128xf32>
    %118 = arith.mulf %113, %117 : vector<8x128xf32>
    %119 = arith.addf %115, %118 : vector<8x128xf32>
    %120 = math.tanh %119 : vector<8x128xf32>
    %121 = arith.subf %95, %120 : vector<8x128xf32>
    %122 = arith.mulf %114, %121 : vector<8x128xf32>
    %123 = arith.addf %120, %122 : vector<8x128xf32>
    %124 = arith.index_cast %c3_i32 : i32 to index
    %c0_37 = arith.constant 0 : index
    %c0_38 = arith.constant 0 : index
    %125 = vector.load %arg7[%124, %c0_37, %c0_38] : memref<8x8x128xf32, #tpu.memory_space<vmem>>, vector<1x8x128xf32>
    %126 = vector.shape_cast %125 : vector<1x8x128xf32> to vector<8x128xf32>
    %127 = vector.shape_cast %123 : vector<8x128xf32> to vector<1x8x128xf32>
    tpu.vector_store %arg7[%124, %c0_37, %c0_38], %127 {strides = array<i32>} : memref<8x8x128xf32, #tpu.memory_space<vmem>>, vector<1x8x128xf32>,
    %c4_i32 = arith.constant 4 : i32
    %c8_i32_39 = arith.constant 8 : i32
    %128 = arith.muli %c4_i32, %c8_i32_39 : i32
    %129 = tpu.assume_multiple %128, 8 : i32
    %130 = arith.index_cast %129 : i32 to index
    %c0_40 = arith.constant 0 : index
    %131 = vector.load %arg8[%130, %c0_40] : memref<64x384xf32, #tpu.memory_space<vmem>>, vector<8x384xf32>
    %cst_41 = arith.constant dense<0.000000e+00> : vector<8x384xf32>
    %132 = tpu.matmul %123, %11, %cst_41 {dimension_numbers = #tpu.dot_dimension_numbers<[1], [0], [0], [1], [0, 0, 1, 1], [], []>} : vector<8x128xf32>, vector<128x384xf32>, vector<8x384xf32> -> vector<8x384xf32>
    %133 = vector.extract_strided_slice %131 {offsets = [0, 0], sizes = [8, 256], strides = [1, 1]} : vector<8x384xf32> to vector<8x256xf32>
    %134 = vector.extract_strided_slice %132 {offsets = [0, 0], sizes = [8, 256], strides = [1, 1]} : vector<8x384xf32> to vector<8x256xf32>
    %135 = arith.addf %133, %134 : vector<8x256xf32>
    %136 = arith.negf %135 : vector<8x256xf32>
    %137 = math.exp %136 : vector<8x256xf32>
    %cst_42 = arith.constant 1.000000e+00 : f32
    %138 = vector.broadcast %cst_42 : f32 to vector<8x256xf32>
    %139 = arith.addf %138, %137 : vector<8x256xf32>
    %140 = arith.divf %138, %139 : vector<8x256xf32>
    %141 = vector.extract_strided_slice %140 {offsets = [0, 0], sizes = [8, 128], strides = [1, 1]} : vector<8x256xf32> to vector<8x128xf32>
    %142 = vector.extract_strided_slice %140 {offsets = [0, 128], sizes = [8, 128], strides = [1, 1]} : vector<8x256xf32> to vector<8x128xf32>
    %143 = vector.extract_strided_slice %131 {offsets = [0, 256], sizes = [8, 128], strides = [1, 1]} : vector<8x384xf32> to vector<8x128xf32>
    %144 = vector.extract_strided_slice %132 {offsets = [0, 256], sizes = [8, 128], strides = [1, 1]} : vector<8x384xf32> to vector<8x128xf32>
    %145 = arith.addf %144, %14 : vector<8x128xf32>
    %146 = arith.mulf %141, %145 : vector<8x128xf32>
    %147 = arith.addf %143, %146 : vector<8x128xf32>
    %148 = math.tanh %147 : vector<8x128xf32>
    %149 = arith.subf %123, %148 : vector<8x128xf32>
    %150 = arith.mulf %142, %149 : vector<8x128xf32>
    %151 = arith.addf %148, %150 : vector<8x128xf32>
    %152 = arith.index_cast %c4_i32 : i32 to index
    %c0_43 = arith.constant 0 : index
    %c0_44 = arith.constant 0 : index
    %153 = vector.load %arg7[%152, %c0_43, %c0_44] : memref<8x8x128xf32, #tpu.memory_space<vmem>>, vector<1x8x128xf32>
    %154 = vector.shape_cast %153 : vector<1x8x128xf32> to vector<8x128xf32>
    %155 = vector.shape_cast %151 : vector<8x128xf32> to vector<1x8x128xf32>
    tpu.vector_store %arg7[%152, %c0_43, %c0_44], %155 {strides = array<i32>} : memref<8x8x128xf32, #tpu.memory_space<vmem>>, vector<1x8x128xf32>,
    %c5_i32 = arith.constant 5 : i32
    %c8_i32_45 = arith.constant 8 : i32
    %156 = arith.muli %c5_i32, %c8_i32_45 : i32
    %157 = tpu.assume_multiple %156, 8 : i32
    %158 = arith.index_cast %157 : i32 to index
    %c0_46 = arith.constant 0 : index
    %159 = vector.load %arg8[%158, %c0_46] : memref<64x384xf32, #tpu.memory_space<vmem>>, vector<8x384xf32>
    %cst_47 = arith.constant dense<0.000000e+00> : vector<8x384xf32>
    %160 = tpu.matmul %151, %11, %cst_47 {dimension_numbers = #tpu.dot_dimension_numbers<[1], [0], [0], [1], [0, 0, 1, 1], [], []>} : vector<8x128xf32>, vector<128x384xf32>, vector<8x384xf32> -> vector<8x384xf32>
    %161 = vector.extract_strided_slice %159 {offsets = [0, 0], sizes = [8, 256], strides = [1, 1]} : vector<8x384xf32> to vector<8x256xf32>
    %162 = vector.extract_strided_slice %160 {offsets = [0, 0], sizes = [8, 256], strides = [1, 1]} : vector<8x384xf32> to vector<8x256xf32>
    %163 = arith.addf %161, %162 : vector<8x256xf32>
    %164 = arith.negf %163 : vector<8x256xf32>
    %165 = math.exp %164 : vector<8x256xf32>
    %cst_48 = arith.constant 1.000000e+00 : f32
    %166 = vector.broadcast %cst_48 : f32 to vector<8x256xf32>
    %167 = arith.addf %166, %165 : vector<8x256xf32>
    %168 = arith.divf %166, %167 : vector<8x256xf32>
    %169 = vector.extract_strided_slice %168 {offsets = [0, 0], sizes = [8, 128], strides = [1, 1]} : vector<8x256xf32> to vector<8x128xf32>
    %170 = vector.extract_strided_slice %168 {offsets = [0, 128], sizes = [8, 128], strides = [1, 1]} : vector<8x256xf32> to vector<8x128xf32>
    %171 = vector.extract_strided_slice %159 {offsets = [0, 256], sizes = [8, 128], strides = [1, 1]} : vector<8x384xf32> to vector<8x128xf32>
    %172 = vector.extract_strided_slice %160 {offsets = [0, 256], sizes = [8, 128], strides = [1, 1]} : vector<8x384xf32> to vector<8x128xf32>
    %173 = arith.addf %172, %14 : vector<8x128xf32>
    %174 = arith.mulf %169, %173 : vector<8x128xf32>
    %175 = arith.addf %171, %174 : vector<8x128xf32>
    %176 = math.tanh %175 : vector<8x128xf32>
    %177 = arith.subf %151, %176 : vector<8x128xf32>
    %178 = arith.mulf %170, %177 : vector<8x128xf32>
    %179 = arith.addf %176, %178 : vector<8x128xf32>
    %180 = arith.index_cast %c5_i32 : i32 to index
    %c0_49 = arith.constant 0 : index
    %c0_50 = arith.constant 0 : index
    %181 = vector.load %arg7[%180, %c0_49, %c0_50] : memref<8x8x128xf32, #tpu.memory_space<vmem>>, vector<1x8x128xf32>
    %182 = vector.shape_cast %181 : vector<1x8x128xf32> to vector<8x128xf32>
    %183 = vector.shape_cast %179 : vector<8x128xf32> to vector<1x8x128xf32>
    tpu.vector_store %arg7[%180, %c0_49, %c0_50], %183 {strides = array<i32>} : memref<8x8x128xf32, #tpu.memory_space<vmem>>, vector<1x8x128xf32>,
    %c6_i32 = arith.constant 6 : i32
    %c8_i32_51 = arith.constant 8 : i32
    %184 = arith.muli %c6_i32, %c8_i32_51 : i32
    %185 = tpu.assume_multiple %184, 8 : i32
    %186 = arith.index_cast %185 : i32 to index
    %c0_52 = arith.constant 0 : index
    %187 = vector.load %arg8[%186, %c0_52] : memref<64x384xf32, #tpu.memory_space<vmem>>, vector<8x384xf32>
    %cst_53 = arith.constant dense<0.000000e+00> : vector<8x384xf32>
    %188 = tpu.matmul %179, %11, %cst_53 {dimension_numbers = #tpu.dot_dimension_numbers<[1], [0], [0], [1], [0, 0, 1, 1], [], []>} : vector<8x128xf32>, vector<128x384xf32>, vector<8x384xf32> -> vector<8x384xf32>
    %189 = vector.extract_strided_slice %187 {offsets = [0, 0], sizes = [8, 256], strides = [1, 1]} : vector<8x384xf32> to vector<8x256xf32>
    %190 = vector.extract_strided_slice %188 {offsets = [0, 0], sizes = [8, 256], strides = [1, 1]} : vector<8x384xf32> to vector<8x256xf32>
    %191 = arith.addf %189, %190 : vector<8x256xf32>
    %192 = arith.negf %191 : vector<8x256xf32>
    %193 = math.exp %192 : vector<8x256xf32>
    %cst_54 = arith.constant 1.000000e+00 : f32
    %194 = vector.broadcast %cst_54 : f32 to vector<8x256xf32>
    %195 = arith.addf %194, %193 : vector<8x256xf32>
    %196 = arith.divf %194, %195 : vector<8x256xf32>
    %197 = vector.extract_strided_slice %196 {offsets = [0, 0], sizes = [8, 128], strides = [1, 1]} : vector<8x256xf32> to vector<8x128xf32>
    %198 = vector.extract_strided_slice %196 {offsets = [0, 128], sizes = [8, 128], strides = [1, 1]} : vector<8x256xf32> to vector<8x128xf32>
    %199 = vector.extract_strided_slice %187 {offsets = [0, 256], sizes = [8, 128], strides = [1, 1]} : vector<8x384xf32> to vector<8x128xf32>
    %200 = vector.extract_strided_slice %188 {offsets = [0, 256], sizes = [8, 128], strides = [1, 1]} : vector<8x384xf32> to vector<8x128xf32>
    %201 = arith.addf %200, %14 : vector<8x128xf32>
    %202 = arith.mulf %197, %201 : vector<8x128xf32>
    %203 = arith.addf %199, %202 : vector<8x128xf32>
    %204 = math.tanh %203 : vector<8x128xf32>
    %205 = arith.subf %179, %204 : vector<8x128xf32>
    %206 = arith.mulf %198, %205 : vector<8x128xf32>
    %207 = arith.addf %204, %206 : vector<8x128xf32>
    %208 = arith.index_cast %c6_i32 : i32 to index
    %c0_55 = arith.constant 0 : index
    %c0_56 = arith.constant 0 : index
    %209 = vector.load %arg7[%208, %c0_55, %c0_56] : memref<8x8x128xf32, #tpu.memory_space<vmem>>, vector<1x8x128xf32>
    %210 = vector.shape_cast %209 : vector<1x8x128xf32> to vector<8x128xf32>
    %211 = vector.shape_cast %207 : vector<8x128xf32> to vector<1x8x128xf32>
    tpu.vector_store %arg7[%208, %c0_55, %c0_56], %211 {strides = array<i32>} : memref<8x8x128xf32, #tpu.memory_space<vmem>>, vector<1x8x128xf32>,
    %c7_i32 = arith.constant 7 : i32
    %c8_i32_57 = arith.constant 8 : i32
    %212 = arith.muli %c7_i32, %c8_i32_57 : i32
    %213 = tpu.assume_multiple %212, 8 : i32
    %214 = arith.index_cast %213 : i32 to index
    %c0_58 = arith.constant 0 : index
    %215 = vector.load %arg8[%214, %c0_58] : memref<64x384xf32, #tpu.memory_space<vmem>>, vector<8x384xf32>
    %cst_59 = arith.constant dense<0.000000e+00> : vector<8x384xf32>
    %216 = tpu.matmul %207, %11, %cst_59 {dimension_numbers = #tpu.dot_dimension_numbers<[1], [0], [0], [1], [0, 0, 1, 1], [], []>} : vector<8x128xf32>, vector<128x384xf32>, vector<8x384xf32> -> vector<8x384xf32>
    %217 = vector.extract_strided_slice %215 {offsets = [0, 0], sizes = [8, 256], strides = [1, 1]} : vector<8x384xf32> to vector<8x256xf32>
    %218 = vector.extract_strided_slice %216 {offsets = [0, 0], sizes = [8, 256], strides = [1, 1]} : vector<8x384xf32> to vector<8x256xf32>
    %219 = arith.addf %217, %218 : vector<8x256xf32>
    %220 = arith.negf %219 : vector<8x256xf32>
    %221 = math.exp %220 : vector<8x256xf32>
    %cst_60 = arith.constant 1.000000e+00 : f32
    %222 = vector.broadcast %cst_60 : f32 to vector<8x256xf32>
    %223 = arith.addf %222, %221 : vector<8x256xf32>
    %224 = arith.divf %222, %223 : vector<8x256xf32>
    %225 = vector.extract_strided_slice %224 {offsets = [0, 0], sizes = [8, 128], strides = [1, 1]} : vector<8x256xf32> to vector<8x128xf32>
    %226 = vector.extract_strided_slice %224 {offsets = [0, 128], sizes = [8, 128], strides = [1, 1]} : vector<8x256xf32> to vector<8x128xf32>
    %227 = vector.extract_strided_slice %215 {offsets = [0, 256], sizes = [8, 128], strides = [1, 1]} : vector<8x384xf32> to vector<8x128xf32>
    %228 = vector.extract_strided_slice %216 {offsets = [0, 256], sizes = [8, 128], strides = [1, 1]} : vector<8x384xf32> to vector<8x128xf32>
    %229 = arith.addf %228, %14 : vector<8x128xf32>
    %230 = arith.mulf %225, %229 : vector<8x128xf32>
    %231 = arith.addf %227, %230 : vector<8x128xf32>
    %232 = math.tanh %231 : vector<8x128xf32>
    %233 = arith.subf %207, %232 : vector<8x128xf32>
    %234 = arith.mulf %226, %233 : vector<8x128xf32>
    %235 = arith.addf %232, %234 : vector<8x128xf32>
    %236 = arith.index_cast %c7_i32 : i32 to index
    %c0_61 = arith.constant 0 : index
    %c0_62 = arith.constant 0 : index
    %237 = vector.load %arg7[%236, %c0_61, %c0_62] : memref<8x8x128xf32, #tpu.memory_space<vmem>>, vector<1x8x128xf32>
    %238 = vector.shape_cast %237 : vector<1x8x128xf32> to vector<8x128xf32>
    %239 = vector.shape_cast %235 : vector<8x128xf32> to vector<1x8x128xf32>
    tpu.vector_store %arg7[%236, %c0_61, %c0_62], %239 {strides = array<i32>} : memref<8x8x128xf32, #tpu.memory_space<vmem>>, vector<1x8x128xf32>,
    %c8_i32_63 = arith.constant 8 : i32
    %c0_64 = arith.constant 0 : index
    %c0_65 = arith.constant 0 : index
    %240 = vector.load %arg9[%c0_64, %c0_65] : memref<8x128xf32, #tpu.memory_space<vmem>>, vector<8x128xf32>
    tpu.vector_store %arg9[%c0_64, %c0_65], %235 {strides = array<i32>} : memref<8x128xf32, #tpu.memory_space<vmem>>, vector<8x128xf32>,
    return
  }
  func.func @transform_0(%arg0: i32, %arg1: i32) -> (i32, i32, i32) {
    %c0_i32 = arith.constant 0 : i32
    %c0_i32_0 = arith.constant 0 : i32
    return %arg1, %arg0, %c0_i32 : i32, i32, i32
  }
  func.func @transform_1(%arg0: i32, %arg1: i32) -> (i32, i32) {
    %c0_i32 = arith.constant 0 : i32
    %c0_i32_0 = arith.constant 0 : i32
    %c0_i32_1 = arith.constant 0 : i32
    return %c0_i32, %c0_i32_0 : i32, i32
  }
  func.func @transform_2(%arg0: i32, %arg1: i32) -> (i32, i32) {
    %c0_i32 = arith.constant 0 : i32
    %c0_i32_0 = arith.constant 0 : i32
    %c0_i32_1 = arith.constant 0 : i32
    return %c0_i32, %c0_i32_0 : i32, i32
  }
  func.func @transform_3(%arg0: i32, %arg1: i32) -> (i32, i32) {
    %c0_i32 = arith.constant 0 : i32
    %c0_i32_0 = arith.constant 0 : i32
    %c0_i32_1 = arith.constant 0 : i32
    return %c0_i32, %c0_i32_0 : i32, i32
  }
  func.func @transform_4(%arg0: i32, %arg1: i32) -> (i32, i32) {
    %c0_i32 = arith.constant 0 : i32
    %c0_i32_0 = arith.constant 0 : i32
    %c0_i32_1 = arith.constant 0 : i32
    return %c0_i32, %c0_i32_0 : i32, i32
  }
  func.func @transform_5(%arg0: i32, %arg1: i32) -> (i32, i32, i32) {
    %c0_i32 = arith.constant 0 : i32
    %c0_i32_0 = arith.constant 0 : i32
    return %arg1, %arg0, %c0_i32 : i32, i32, i32
  }
}

</mosaic_0001>

<bundles_post_ra>
// kernel: tpu_custom_call.1
= control target key start
LH: loop header
LB: loop body
LE: loop exit
PB: predicated region body
PF: predicated region fallthrough
CT: control target
= control target key end

     0   :  { %7 = vsyncpa [#allocation3], 0  ;;  %s651_s0 = inlined_call_operand.hbm [shape: f32[8,128], index: 0, kind: input, shape index: {}]   ;;  %s652_s1 = inlined_call_operand.hbm [shape: f32[16,128], index: 1, kind: input, shape index: {}]   ;;  %s653_s2 = inlined_call_operand.hbm [shape: f32[16,128], index: 2, kind: output, shape index: {}]  }
   0x1   :  { %8 = vsyncpa [#allocation6], 0 }
   0x2   :  { %10 = vsyncpa [#allocation6 + $0x1], 0 }
   0x3   :  { %11 = vsyncpa [#allocation4], 0 }
   0x4   :  { %13 = vsyncpa [#allocation4 + $0x1], 0  ;;  %s485_s9 = smov 0   ;;  %s487_s10 = smov 0  }
   0x5   :  { %s489_s11 = smov 0   ;;  %s491_s12 = smov 0  }
   0x6 LB: > { %s506_s13 = sadd.s32 4294967295, %s465_s12   ;;  %s272_s14 = sadd.s32 4294967294, %s465_s12   ;;  %s465_s12 = sphi %s491_s12, %s676_s12   ;;  %s461_s11 = sphi %s489_s11, %s675_s11   ;;  %s457_s10 = sphi %s487_s10, %s674_s10   ;;  %s453_s9 = sphi %s485_s9, %s673_s9  }
   0x7   : > { %p60_p0 = scmp.ne.s32.totalorder %s457_s10, %s453_s9  ;;  %p654_p1 = scmp.eq.s32.totalorder %s506_s13, 0 }
   0x8   : > { %p90_p3 = scmp.eq.s32.totalorder %s272_s14, 1  ;;  %p273_p5 = scmp.ge.s32.totalorder %s465_s12, 1 }
   0x9   : > { %p515_p4 = por %p654_p1, %p60_p0  ;;  %p97_p7 = scmp.lt.s32.totalorder %s465_s12, 3 }
   0xa   : > { %p520_p6 = por %p90_p3, %p60_p0  ;;  %s467_s18 = smov [#allocation2]  }
   0xb   : > { %s658_s15 = scalar_select %p515_p4, 1, 0 }
   0xc   : > { %s659_s16 = scalar_select %p520_p6, 1, 0 }
   0xd   : > { %p525_p8 = pnand %p273_p5, %p97_p7  ;;  %s110_s19 = sshll.u32 %s467_s18, 4  ;;  %s111_s19 = int_to_ptr.vmem [resolvable:$true] %s110_s19 }
   0xe   : > { %s533_s20 = sadd.s32 1, %s465_s12   ;;  %s47_s24 = sadd.s32 1, %s461_s11 }
   0xf   : > { %s660_s17 = scalar_select %p525_p8, 1, 0 }
  0x10   : > { %p294_p10 = pneg %p525_p8  ;;  %s44_s22 = ssub.s32 %s465_s12, %s533_s20 }
  0x11   : > { %p543_p12 = scmp.eq.s32.totalorder %s44_s22, 0  ;;  %p54_p13 = scmp.ne.s32.totalorder %s461_s11, %s457_s10 }
  0x12   : > { %p537_p11 = pnand %p294_p10, %p654_p1  ;;  %s354_s25 = scalar_lea.vmem %s111_s19, 128 }
  0x13   : > { %p355_p3 = scmp.ne.s32.totalorder %s111_s19, %s354_s25  ;;  %p362_p9 = scmp.lt.s32.totalorder %s111_s19, %s111_s19 }
  0x14   : > { %p345_p0 = pneg %p537_p11  ;;  %p363_p2 = scmp.lt.s32.totalorder %s354_s25, %s354_s25 }
  0x16   : > { %p357_p5 = pnand %p355_p3, %p345_p0  ;;  %p364_p10 = por %p363_p2, %p362_p9 }
  0x18   : > { %p358_p7 = pneg %p357_p5 }
  0x1a   : > { %p365_p1 = pnand %p364_p10, %p358_p7 }
  0x1c   : > { %368 = shalt.err (!%p365_p1)
}
  0x1d   : > { %297 = dma.hbm_to_vmem [thread:$0]  (!%p537_p11), %s651_s0, 128, %s111_s19, [#allocation3]  }
  0x1e   : > { %s560_s28 = scalar_select %p543_p12, %s461_s11, %s47_s24  }
  0x1f   : > { %p55_p1 = scmp.eq.s32.totalorder %s465_s12, 0  ;;  %p663_p2 = scmp.eq.s32.totalorder %s506_s13, 1 }
  0x20   : > { %p307_p0 = scmp.lt.s32.totalorder %s465_s12, 2  ;;  %s121_s30 = sand.u32 1, %s461_s11  }
  0x21   : > { %p568_p9 = por %p663_p2, %p54_p13  ;;  %p56_p3 = por %p55_p1, %p54_p13 }
  0x22   : > { %s276_s3 = sshll.u32 %s121_s30, 3  ;;  %s277_s4 = sshll.u32 %s465_s12, 7 }
  0x23   : > { %s664_s29 = scalar_select %p568_p9, 1, 0 }
  0x24   : > { %s581_s7 = scalar_lea.hbm %s652_s1, %s277_s4  ;;  %s125_s8 = scalar_lea.vmem [#allocation5], %s276_s3 }
  0x25   : > { %s132_s14 = sshll.u32 %s125_s8, 4  ;;  %p583_p11 = pnand %p307_p0, %p56_p3  ;;  %s133_s14 = int_to_ptr.vmem [resolvable:$true] %s132_s14 }
  0x26   : > { %s122_s19 = scalar_lea.sflag [#allocation6], %s121_s30  ;;  %s369_s21 = scalar_lea.hbm %s581_s7, 128 }
  0x27   : > { %p370_p12 = scmp.ne.s32.totalorder %s581_s7, %s369_s21  ;;  %p371_p13 = pneg %p583_p11 }
  0x28   : > { %s374_s24 = scalar_lea.hbm %s652_s1, 256  ;;  %p375_p10 = scmp.lt.s32.totalorder %s581_s7, %s652_s1 }
  0x29   : > { %p372_p5 = pnand %p371_p13, %p370_p12  ;;  %p376_p1 = scmp.lt.s32.totalorder %s374_s24, %s369_s21 }
  0x2b   : > { %p373_p7 = pneg %p372_p5  ;;  %p377_p2 = por %p376_p1, %p375_p10 }
  0x2d   : > { %p378_p0 = pnand %p377_p2, %p373_p7 }
  0x2f   : > { %381 = shalt.err (!%p378_p0)
}
  0x30   : > { %s382_s27 = scalar_lea.vmem %s133_s14, 128  ;;  %s468_s30 = smov [#allocation5]  }
  0x31   : > { %p383_p3 = scmp.ne.s32.totalorder %s133_s14, %s382_s27  ;;  %s387_s3 = sshll.u32 %s468_s30, 4  ;;  %s388_s3 = int_to_ptr.vmem [resolvable:$false] %s387_s3 }
  0x32   : > { %s389_s4 = scalar_lea.vmem %s388_s3, 256  ;;  %p390_p12 = scmp.lt.s32.totalorder %s133_s14, %s388_s3 }
  0x33   : > { %p385_p6 = pnand %p383_p3, %p371_p13  ;;  %p391_p5 = scmp.lt.s32.totalorder %s389_s4, %s382_s27 }
  0x35   : > { %p386_p9 = pneg %p385_p6  ;;  %p392_p4 = por %p391_p5, %p390_p12 }
  0x37   : > { %p393_p8 = pnand %p392_p4, %p386_p9 }
  0x39   : > { %396 = shalt.err (!%p393_p8)
}
  0x3a   : > { %301 = dma.hbm_to_vmem [thread:$0]  (!%p583_p11), %s581_s7, 128, %s133_s14, %s122_s19  }
  0x3b   : > { %p666_p7 = scmp.ne.s32.totalorder %s660_s17, 0 }
  0x3c   : > { %p667_p10 = scmp.eq.s32.totalorder (!%p666_p7), %s506_s13, 0 }
  0x3d   : > { %141 = sbr.rel (%p666_p7) target bundleno = 96 (0x60), region = 28 }
  0x42   : > { %440 = dma.done.wait (%p667_p10), [#allocation3], 128   ;;  %p668_p6 = pmov %p667_p10 }
  0x43   : > { %s608_s5 = sand.u32 1, %s457_s10   ;;  %p669_p4 = scmp.ne.s32.totalorder %s658_s15, 0 }
  0x44   : > { %442 = vsyncadd (%p668_p6), [#allocation3], 4294967168  ;;  %s280_s6 = sshll.u32 %s608_s5, 3  ;;  %s148_s8 = scalar_lea.sflag [#allocation6], %s608_s5 }
  0x45   : > { %s151_s18 = scalar_lea.vmem [#allocation5], %s280_s6 }
  0x46   : > { %444 = dma.done.wait (%p669_p4), %s148_s8, 128  }
  0x47   : > { %446 = vsyncadd (%p669_p4), %s148_s8, 4294967168  ;;  %s171_s17 = scalar_lea.vmem [#allocation7], %s280_s6  ;;  %s283_s14 = sshll.u32 %s506_s13, 7  ;;  %v172_v0 = vld [vmem:[%s151_s18] sm:$0xff]  ;;  %v173_v1 = vld [vmem:[#allocation2] sm:$0xff] }
  0x48   : > { %s190_s7 = sshll.u32 %s171_s17, 4  ;;  %v174_v2 = vadd.f32 %v173_v1, %v172_v0  ;;  %s188_s22 = scalar_lea.hbm %s653_s2, %s283_s14  ;;  %s191_s7 = int_to_ptr.vmem [resolvable:$true] %s190_s7 }
  0x49   : > { %s177_s23 = scalar_lea.sflag [#allocation4], %s608_s5  ;;  %s397_s24 = scalar_lea.vmem %s191_s7, 128 }
  0x4a   : > { %175 = vst [vmem:[%s171_s17] sm:$0xff] %v174_v2  ;;  %p398_p8 = scmp.ne.s32.totalorder %s191_s7, %s397_s24  ;;  %p670_p9 = scmp.ne.s32.totalorder %s664_s29, 0 }
  0x4b   : > { %s469_s15 = smov [#allocation7]  }
  0x4c   : > { %p399_p11 = pnand %p398_p8, %p670_p9  ;;  %s401_s25 = sshll.u32 %s469_s15, 4  ;;  %s402_s25 = int_to_ptr.vmem [resolvable:$false] %s401_s25 }
  0x4d   : > { %s403_s26 = scalar_lea.vmem %s402_s25, 256  ;;  %p404_p1 = scmp.lt.s32.totalorder %s191_s7, %s402_s25 }
  0x4e   : > { %p400_p13 = pneg %p399_p11  ;;  %p405_p2 = scmp.lt.s32.totalorder %s403_s26, %s397_s24 }
  0x50   : > { %p406_p0 = por %p405_p2, %p404_p1 }
  0x52   : > { %p407_p3 = pnand %p406_p0, %p400_p13 }
  0x54   : > { %410 = shalt.err (!%p407_p3)
}
  0x55   : > { %s411_s13 = scalar_lea.hbm %s188_s22, 128  ;;  %s415_s3 = scalar_lea.hbm %s653_s2, 256 }
  0x56   : > { %p412_p12 = scmp.ne.s32.totalorder %s188_s22, %s411_s13  ;;  %p416_p10 = scmp.lt.s32.totalorder %s188_s22, %s653_s2 }
  0x57   : > { %p417_p6 = scmp.lt.s32.totalorder %s415_s3, %s411_s13 }
  0x58   : > { %p413_p5 = pnand %p412_p12, %p670_p9 }
  0x59   : > { %p418_p4 = por %p417_p6, %p416_p10 }
  0x5a   : > { %p414_p7 = pneg %p413_p5 }
  0x5c   : > { %p419_p8 = pnand %p418_p4, %p414_p7 }
  0x5e   : > { %422 = shalt.err (!%p419_p8)
}
  0x5f   : > { %292 = dma.vmem_to_hbm [thread:$0]  (%p670_p9), %s191_s7, 128, %s188_s22, %s177_s23  }
  0x60 PF: > { %s202_s6 = sand.u32 1, %s453_s9   ;;  %p671_p11 = scmp.ne.s32.totalorder %s659_s16, 0 }
  0x61   : > { %p672_p13 = scmp.ge.s32.totalorder %s465_s12, 2  ;;  %s203_s8 = scalar_lea.sflag [#allocation4], %s202_s6 }
  0x63   : > { %p303_p1 = pnand %p672_p13, %p671_p11 }
  0x65   : > { %p304_p2 = pneg %p303_p1 }
  0x67   : > { %448 = dma.done.wait (%p304_p2), %s203_s8, 128  }
  0x68   : > { %450 = vsyncadd (%p304_p2), %s203_s8, 4294967168  ;;  %p16_p0 = scmp.ge.s32.totalorder %s533_s20, 4   ;;  %s673_s9 = smov %s457_s10 }
  0x69   : > { %s674_s10 = smov %s461_s11  ;;  %s675_s11 = smov %s560_s28 }
  0x6a   : > { %s676_s12 = smov %s533_s20  ;;  %18 = sbr.rel (!%p16_p0) target bundleno = 6 (0x6), region = 78 }
  0x6f   :  { %208 = vsyncpa [#allocation3], 1 }
  0x70   :  { %210 = vsyncpa [#allocation3 + $0x1], 1 }
  0x71   :  { %211 = vsyncpa [#allocation6], 1 }
  0x72   :  { %213 = vsyncpa [#allocation6 + $0x1], 1 }
  0x73   :  { %214 = vsyncpa [#allocation4], 1 }
  0x74   :  { %216 = vsyncpa [#allocation4 + $0x1], 1 }

// kernel: tpu_custom_call.1
= control target key start
LH: loop header
LB: loop body
LE: loop exit
PB: predicated region body
PF: predicated region fallthrough
CT: control target
= control target key end

     0   :  { %10 = vsyncpa [#allocation5], 0  ;;  %s3481_s0 = inlined_call_operand.hbm [shape: f32[8,8,128], index: 0, kind: input, shape index: {}]   ;;  %s3482_s1 = inlined_call_operand.hbm [shape: f32[128,384], index: 1, kind: input, shape index: {}]   ;;  %s3483_s2 = inlined_call_operand.hbm [shape: f32[128,384], index: 2, kind: input, shape index: {}]   ;;  %s3484_s3 = inlined_call_operand.vmem [shape: f32[1,384], index: 3, kind: input, shape index: {}]   ;;  %s3485_s4 = inlined_call_operand.vmem [shape: f32[1,128], index: 4, kind: input, shape index: {}]   ;;  %s3486_s5 = inlined_call_operand.hbm [shape: f32[8,8,128], index: 5, kind: output, shape index: {}]  }
   0x1   :  { %11 = vsyncpa [#allocation8], 0 }
   0x2   :  { %12 = vsyncpa [#allocation6], 0  ;;  %s2549_s18 = smov [#allocation7]  }
   0x3   :  { %s30_s19 = sshll.u32 %s2549_s18, 4  ;;  %s31_s19 = int_to_ptr.vmem [resolvable:$true] %s30_s19 }
   0x4   :  { %s2471_s20 = scalar_lea.vmem %s31_s19, 6144  ;;  %p2476_p1 = scmp.lt.s32.totalorder %s31_s19, %s31_s19 }
   0x5   :  { %p2472_p0 = scmp.ne.s32.totalorder %s31_s19, %s2471_s20  ;;  %p2477_p2 = scmp.lt.s32.totalorder %s2471_s20, %s2471_s20 }
   0x7   :  { %p2478_p3 = por %p2477_p2, %p2476_p1 }
   0x9   :  { %p2479_p4 = pnand %p2478_p3, %p2472_p0 }
   0xb   :  { %2482 = shalt.err (!%p2479_p4)
}
   0xc   :  { %s2550_s21 = smov 384   ;;  %s2551_s22 = smov 24  }
   0xd   :  { %36 = dma.hbm_to_vmem [thread:$0]  %s3482_s1, 6144, %s31_s19, [#allocation8], %s2550_s21, %s2550_s21, %s2551_s22  }
   0xe   :  { %s2552_s25 = smov [#allocation4]  }
   0xf   :  { %s18_s26 = sshll.u32 %s2552_s25, 4  ;;  %s19_s26 = int_to_ptr.vmem [resolvable:$true] %s18_s26 }
  0x10   :  { %s2491_s27 = scalar_lea.vmem %s19_s26, 1024  ;;  %p2496_p6 = scmp.lt.s32.totalorder %s19_s26, %s19_s26 }
  0x11   :  { %p2492_p5 = scmp.ne.s32.totalorder %s19_s26, %s2491_s27  ;;  %p2497_p7 = scmp.lt.s32.totalorder %s2491_s27, %s2491_s27 }
  0x13   :  { %p2498_p8 = por %p2497_p7, %p2496_p6 }
  0x15   :  { %p2499_p9 = pnand %p2498_p8, %p2492_p5 }
  0x17   :  { %2502 = shalt.err (!%p2499_p9)
}
  0x18   :  { %s2553_s28 = smov 128   ;;  %s2554_s29 = smov 8  }
  0x19   :  { %24 = dma.hbm_to_vmem [thread:$0]  %s3481_s0, 1024, %s19_s26, [#allocation5], %s2553_s28, %s2553_s28, %s2554_s29  }
  0x1a   :  { %s2555_s1 = smov [#allocation9]  }
  0x1b   :  { %s42_s7 = sshll.u32 %s2555_s1, 4  ;;  %s43_s7 = int_to_ptr.vmem [resolvable:$true] %s42_s7 }
  0x1c   :  { %s2511_s8 = scalar_lea.vmem %s43_s7, 6144  ;;  %p2516_p11 = scmp.lt.s32.totalorder %s43_s7, %s43_s7 }
  0x1d   :  { %p2512_p10 = scmp.ne.s32.totalorder %s43_s7, %s2511_s8  ;;  %p2517_p12 = scmp.lt.s32.totalorder %s2511_s8, %s2511_s8 }
  0x1f   :  { %p2518_p13 = por %p2517_p12, %p2516_p11 }
  0x21   :  { %p2519_p0 = pnand %p2518_p13, %p2512_p10 }
  0x23   :  { %2522 = shalt.err (!%p2519_p0)
}
  0x24   :  { %48 = dma.hbm_to_vmem [thread:$0]  %s3483_s2, 6144, %s43_s7, [#allocation8], %s2550_s21, %s2550_s21, %s2551_s22  }
  0x25   :  { %2543 = dma.done.wait [#allocation5], 1024  }
  0x26   :  { %2544 = vsyncadd [#allocation5], 4294966272 }
  0x27   :  { %2545 = dma.done.wait [#allocation8], 12288  }
  0x28   :  { %2546 = vsyncadd [#allocation8], 4294955008  ;;  %v3487_v0 = vmov 0.0   ;;  %v121_v1 = vld [vmem:[#allocation7 + $0x170] sm:$0xff]  ;;  %v120_v2 = vld [vmem:[#allocation7 + $0x168] sm:$0xff]  ;;  %vm2557_vm0 = vmmov 0  }
  0x29   :  { %204 = vmatprep.mubr.f32.mxu0 %v3487_v0  ;;  %v118_v3 = vld [vmem:[#allocation7 + $0x158] sm:$0xff]  ;;  %140 = vmatprep.subr.mxu0 %v121_v1  ;;  %v117_v4 = vld [vmem:[#allocation7 + $0x150] sm:$0xff]  ;;  %v115_v5 = vld [vmem:[#allocation7 + $0x140] sm:$0xff] }
  0x2a   :  { %141 = vmatpush1.msra.mxu0 %v120_v2  ;;  %v114_v6 = vld [vmem:[#allocation7 + $0x138] sm:$0xff]  ;;  %v112_v7 = vld [vmem:[#allocation7 + $0x128] sm:$0xff]  ;;  %v111_v8 = vld [vmem:[#allocation7 + $0x120] sm:$0xff] }
  0x2b   :  { %142 = vmatprep.subr.mxu0 %v118_v3  ;;  %v109_v9 = vld [vmem:[#allocation7 + $0x110] sm:$0xff]  ;;  %v108_v10 = vld [vmem:[#allocation7 + $0x108] sm:$0xff]  ;;  %v106_v11 = vld [vmem:[#allocation7 + $0xf8] sm:$0xff] }
  0x2c   :  { %143 = vmatpush1.msra.mxu0 %v117_v4  ;;  %v105_v12 = vld [vmem:[#allocation7 + $0xf0] sm:$0xff]  ;;  %v103_v13 = vld [vmem:[#allocation7 + $0xe0] sm:$0xff]  ;;  %v122_v14 = vld [vmem:[#allocation7 + $0x178] sm:$0xff] }
  0x2d   :  { %144 = vmatprep.subr.mxu0 %v115_v5  ;;  %v102_v15 = vld [vmem:[#allocation7 + $0xd8] sm:$0xff]  ;;  %2000 = vmatprep.subr.mxu1 %v122_v14  ;;  %v119_v16 = vld [vmem:[#allocation7 + $0x160] sm:$0xff]  ;;  %v100_v17 = vld [vmem:[#allocation7 + $0xc8] sm:$0xff] }
  0x2e   :  { %145 = vmatpush1.msra.mxu0 %v114_v6  ;;  %2001 = vmatpush3.msra.mxu1 %v122_v14  ;;  %v116_v18 = vld [vmem:[#allocation7 + $0x148] sm:$0xff]  ;;  %v99_v19 = vld [vmem:[#allocation7 + $0xc0] sm:$0xff]  ;;  %v97_v20 = vld [vmem:[#allocation7 + $0xb0] sm:$0xff] }
  0x2f   :  { %146 = vmatprep.subr.mxu0 %v112_v7  ;;  %2002 = vmatprep.subr.mxu1 %v119_v16  ;;  %v113_v21 = vld [vmem:[#allocation7 + $0x130] sm:$0xff]  ;;  %v96_v22 = vld [vmem:[#allocation7 + $0xa8] sm:$0xff]  ;;  %v94_v23 = vld [vmem:[#allocation7 + $0x98] sm:$0xff] }
  0x30   :  { %147 = vmatpush1.msra.mxu0 %v111_v8  ;;  %2003 = vmatpush3.msra.mxu1 %v119_v16  ;;  %v110_v24 = vld [vmem:[#allocation7 + $0x118] sm:$0xff]  ;;  %v93_v25 = vld [vmem:[#allocation7 + $0x90] sm:$0xff]  ;;  %v91_v26 = vld [vmem:[#allocation7 + $0x80] sm:$0xff] }
  0x31   :  { %148 = vmatprep.subr.mxu0 %v109_v9  ;;  %2004 = vmatprep.subr.mxu1 %v116_v18  ;;  %v107_v27 = vld [vmem:[#allocation7 + $0x100] sm:$0xff]  ;;  %v90_v28 = vld [vmem:[#allocation7 + $0x78] sm:$0xff]  ;;  %v88_v29 = vld [vmem:[#allocation7 + $0x68] sm:$0xff] }
  0x32   :  { %149 = vmatpush1.msra.mxu0 %v108_v10  ;;  %2005 = vmatpush3.msra.mxu1 %v116_v18  ;;  %v104_v30 = vld [vmem:[#allocation7 + $0xe8] sm:$0xff]  ;;  %v87_v31 = vld [vmem:[#allocation7 + $0x60] sm:$0xff]  ;;  %v85_v32 = vld [vmem:[#allocation7 + $0x50] sm:$0xff] }
  0x33   :  { %150 = vmatprep.subr.mxu0 %v106_v11  ;;  %2006 = vmatprep.subr.mxu1 %v113_v21  ;;  %v101_v33 = vld [vmem:[#allocation7 + $0xd0] sm:$0xff]  ;;  %v84_v34 = vld [vmem:[#allocation7 + $0x48] sm:$0xff]  ;;  %v82_v35 = vld [vmem:[#allocation7 + $0x38] sm:$0xff] }
  0x34   :  { %151 = vmatpush1.msra.mxu0 %v105_v12  ;;  %2007 = vmatpush3.msra.mxu1 %v113_v21  ;;  %v98_v36 = vld [vmem:[#allocation7 + $0xb8] sm:$0xff]  ;;  %v81_v37 = vld [vmem:[#allocation7 + $0x30] sm:$0xff]  ;;  %v79_v38 = vld [vmem:[#allocation7 + $0x20] sm:$0xff] }
  0x35   :  { %152 = vmatprep.subr.mxu0 %v103_v13  ;;  %2008 = vmatprep.subr.mxu1 %v110_v24  ;;  %v95_v39 = vld [vmem:[#allocation7 + $0xa0] sm:$0xff]  ;;  %v78_v40 = vld [vmem:[#allocation7 + $0x18] sm:$0xff]  ;;  %v76_v41 = vld [vmem:[#allocation7 + $0x8] sm:$0xff] }
  0x36   :  { %153 = vmatpush1.msra.mxu0 %v102_v15  ;;  %2009 = vmatpush3.msra.mxu1 %v110_v24  ;;  %v92_v42 = vld [vmem:[#allocation7 + $0x88] sm:$0xff]  ;;  %v75_v43 = vld [vmem:[#allocation7] sm:$0xff]  ;;  %v2604_v45 = vld [vmem:[#allocation9 + $0x170] sm:$0xff] }
  0x37   :  { %154 = vmatprep.subr.mxu0 %v100_v17  ;;  %2010 = vmatprep.subr.mxu1 %v107_v27  ;;  %v2602_v44 = vld [vmem:[#allocation4] sm:$0xff]  ;;  %3506 = vst [vmem:[#allocation14_spill] sm:$0xff] %v2604_v45  ;;  %v2606_v46 = vld [vmem:[#allocation9 + $0x168] sm:$0xff]  ;;  %v2608_v47 = vld [vmem:[#allocation9 + $0x158] sm:$0xff] }
  0x38   :  { %155 = vmatpush1.msra.mxu0 %v99_v19  ;;  %2011 = vmatpush3.msra.mxu1 %v107_v27  ;;  %v89_v48 = vld [vmem:[#allocation7 + $0x70] sm:$0xff]  ;;  %v2616_v50 = vld [vmem:[#allocation4 + $0x8] sm:$0xff]  ;;  %v2618_v51 = vld [vmem:[#allocation9 + $0x140] sm:$0xff] }
  0x39   :  { %156 = vmatprep.subr.mxu0 %v97_v20  ;;  %2012 = vmatprep.subr.mxu1 %v104_v30  ;;  %v2612_v49 = vld [vmem:[#allocation9 + $0x150] sm:$0xff]  ;;  %v2621_v52 = vld [vmem:[#allocation9 + $0x138] sm:$0xff]  ;;  %v2624_v53 = vld [vmem:[#allocation9 + $0x128] sm:$0xff] }
  0x3a   :  { %157 = vmatpush1.msra.mxu0 %v96_v22  ;;  %2013 = vmatpush3.msra.mxu1 %v104_v30  ;;  %v86_v54 = vld [vmem:[#allocation7 + $0x58] sm:$0xff]  ;;  %v2628_v55 = vld [vmem:[#allocation9 + $0x120] sm:$0xff]  ;;  %v2632_v56 = vld [vmem:[#allocation4 + $0x10] sm:$0xff] }
  0x3b   :  { %158 = vmatprep.subr.mxu0 %v94_v23  ;;  %2014 = vmatprep.subr.mxu1 %v101_v33  ;;  %v2634_v57 = vld [vmem:[#allocation9 + $0x110] sm:$0xff]  ;;  %v2637_v58 = vld [vmem:[#allocation9 + $0x108] sm:$0xff]  ;;  %v2640_v59 = vld [vmem:[#allocation9 + $0xf8] sm:$0xff] }
  0x3c   :  { %159 = vmatpush1.msra.mxu0 %v93_v25  ;;  %2015 = vmatpush3.msra.mxu1 %v101_v33  ;;  %v83_v60 = vld [vmem:[#allocation7 + $0x40] sm:$0xff]  ;;  %v2644_v61 = vld [vmem:[#allocation9 + $0xf0] sm:$0xff]  ;;  %v2648_v62 = vld [vmem:[#allocation4 + $0x18] sm:$0xff] }
  0x3d   :  { %160 = vmatprep.subr.mxu0 %v91_v26  ;;  %2016 = vmatprep.subr.mxu1 %v98_v36  ;;  %v2650_v63 = vld [vmem:[#allocation9 + $0xe0] sm:$0xff]  ;;  %v2653_v1 = vld [vmem:[#allocation9 + $0xd8] sm:$0xff]  ;;  %v2656_v2 = vld [vmem:[#allocation9 + $0xc8] sm:$0xff] }
  0x3e   :  { %161 = vmatpush1.msra.mxu0 %v90_v28  ;;  %2017 = vmatpush3.msra.mxu1 %v98_v36  ;;  %v80_v3 = vld [vmem:[#allocation7 + $0x28] sm:$0xff]  ;;  %v2660_v4 = vld [vmem:[#allocation9 + $0xc0] sm:$0xff]  ;;  %v2666_v6 = vld [vmem:[#allocation9 + $0xb0] sm:$0xff] }
  0x3f   :  { %162 = vmatprep.subr.mxu0 %v88_v29  ;;  %2018 = vmatprep.subr.mxu1 %v95_v39  ;;  %v2664_v5 = vld [vmem:[#allocation4 + $0x20] sm:$0xff]  ;;  %v2669_v7 = vld [vmem:[#allocation9 + $0xa8] sm:$0xff]  ;;  %v2672_v8 = vld [vmem:[#allocation9 + $0x98] sm:$0xff] }
  0x40   :  { %163 = vmatpush1.msra.mxu0 %v87_v31  ;;  %2019 = vmatpush3.msra.mxu1 %v95_v39  ;;  %v77_v9 = vld [vmem:[#allocation7 + $0x10] sm:$0xff]  ;;  %v72_v11 = vld [vmem:[#allocation4 + $0x28] sm:$0xff]  ;;  %v2680_v12 = vld [vmem:[#allocation9 + $0x80] sm:$0xff] }
  0x41   :  { %164 = vmatprep.subr.mxu0 %v85_v32  ;;  %2020 = vmatprep.subr.mxu1 %v92_v42  ;;  %v2676_v10 = vld [vmem:[#allocation9 + $0x90] sm:$0xff]  ;;  %v2683_v13 = vld [vmem:[#allocation9 + $0x78] sm:$0xff]  ;;  %v2686_v14 = vld [vmem:[#allocation9 + $0x68] sm:$0xff] }
  0x42   :  { %165 = vmatpush1.msra.mxu0 %v84_v34  ;;  %2021 = vmatpush3.msra.mxu1 %v92_v42  ;;  %v2689_v15 = vld [vmem:[#allocation9 + $0x60] sm:$0xff]  ;;  %v73_v16 = vld [vmem:[#allocation4 + $0x30] sm:$0xff]  ;;  %v2696_v18 = vld [vmem:[#allocation9 + $0x48] sm:$0xff]  ;;  %v125_v42 = vlaneseq }
  0x43   :  { %166 = vmatprep.subr.mxu0 %v82_v35  ;;  %2022 = vmatprep.subr.mxu1 %v89_v48  ;;  %v2693_v17 = vld [vmem:[#allocation9 + $0x50] sm:$0xff]  ;;  %v2700_v19 = vld [vmem:[#allocation9 + $0x38] sm:$0xff]  ;;  %v2710_v23 = vld [vmem:[#allocation9 + $0x20] sm:$0xff] }
  0x44   :  { %167 = vmatpush1.msra.mxu0 %v81_v37  ;;  %2023 = vmatpush3.msra.mxu1 %v89_v48  ;;  %v2704_v20 = vld [vmem:[#allocation9 + $0x30] sm:$0xff]  ;;  %v2706_v21 = vld [vmem:[#allocation9 + $0x178] sm:$0xff]  ;;  %v2717_v25 = vld [vmem:[#allocation9 + $0x8] sm:$0xff] }
  0x45   :  { %168 = vmatprep.subr.mxu0 %v79_v38  ;;  %2024 = vmatprep.subr.mxu1 %v86_v54  ;;  %v74_v22 = vld [vmem:[#allocation4 + $0x38] sm:$0xff]  ;;  %3508 = vst [vmem:[#allocation16_spill] sm:$0xff] %v2717_v25  ;;  %v2721_v26 = vld [vmem:[#allocation9] sm:$0xff]  ;;  %v2729_v28 = vld [vmem:[#allocation9 + $0x148] sm:$0xff] }
  0x46   :  { %169 = vmatpush1.msra.mxu0 %v78_v40  ;;  %2025 = vmatpush3.msra.mxu1 %v86_v54  ;;  %v2713_v24 = vld [vmem:[#allocation9 + $0x18] sm:$0xff]  ;;  %3509 = vst [vmem:[#allocation17_spill] sm:$0xff] %v2721_v26  ;;  %v2723_v27 = vld [vmem:[#allocation9 + $0x160] sm:$0xff]  ;;  %v2735_v29 = vld [vmem:[#allocation9 + $0x130] sm:$0xff] }
  0x47   :  { %170 = vmatprep.subr.mxu0 %v76_v41  ;;  %2026 = vmatprep.subr.mxu1 %v83_v60  ;;  %3507 = vst [vmem:[#allocation15_spill] sm:$0xff] %v2713_v24  ;;  %v2740_v30 = vld [vmem:[#allocation9 + $0x118] sm:$0xff]  ;;  %v2746_v31 = vld [vmem:[#allocation9 + $0x100] sm:$0xff]  ;;  %v2752_v32 = vld [vmem:[#allocation9 + $0xe8] sm:$0xff] }
  0x48   :  { %171 = vmatpush1.msra.mxu0 %v75_v43  ;;  %2027 = vmatpush3.msra.mxu1 %v83_v60  ;;  %v2756_v33 = vld [vmem:[#allocation9 + $0xd0] sm:$0xff]  ;;  %v2762_v34 = vld [vmem:[#allocation9 + $0xb8] sm:$0xff]  ;;  %v2768_v35 = vld [vmem:[#allocation9 + $0xa0] sm:$0xff]  ;;  %v126_v43 = vshrl.u32 %v125_v42, 7 }
  0x49   :  { %205 = vmatmul.mubr.f32.vlgmr.msra.gmra.mxu0 %v2602_v44  ;;  %444 = vmatprep.subr.mxu0 %v2604_v45  ;;  %v2774_v36 = vld [vmem:[#allocation9 + $0x88] sm:$0xff]  ;;  %v2780_v37 = vld [vmem:[#allocation9 + $0x70] sm:$0xff]  ;;  %v2786_v38 = vld [vmem:[#allocation9 + $0x58] sm:$0xff] }
  0x4a   :  { %445 = vmatpush1.msra.mxu0 %v2606_v46  ;;  %210 = vmatprep.mubr.f32.mxu0 %v3487_v0  ;;  %v2792_v39 = vld [vmem:[#allocation9 + $0x40] sm:$0xff]  ;;  %v2798_v40 = vld [vmem:[#allocation9 + $0x28] sm:$0xff]  ;;  %v2804_v41 = vld [vmem:[#allocation9 + $0x10] sm:$0xff]  ;;  %v131_v54 = vsub.s32 1, %v126_v43 }
  0x4b   :  { %446 = vmatprep.subr.mxu0 %v2608_v47  ;;  %2028 = vmatprep.subr.mxu1 %v80_v3  ;;  %3510 = vst [vmem:[#allocation18_spill] sm:$0xff] %v2798_v40  ;;  %3511 = vst [vmem:[#allocation19_spill] sm:$0xff] %v2804_v41  ;;  %v123_v48 = vld [vmem:[%s3484_s3] sm:$0x7] }
  0x4c   :  { %447 = vmatpush1.msra.mxu0 %v2612_v49  ;;  %2029 = vmatpush3.msra.mxu1 %v80_v3  ;;  %v132_v3 = vrot.slane %v123_v48, %v131_v54 }
  0x4d   :  { %211 = vmatmul.mubr.f32.gmra.mxu0 %v2616_v50  ;;  %448 = vmatprep.subr.mxu0 %v2618_v51 }
  0x4e   :  { %449 = vmatpush1.msra.mxu0 %v2621_v52  ;;  %216 = vmatprep.mubr.f32.mxu0 %v3487_v0 }
  0x4f   :  { %450 = vmatprep.subr.mxu0 %v2624_v53  ;;  %2030 = vmatprep.subr.mxu1 %v77_v9 }
  0x50   :  { %451 = vmatpush1.msra.mxu0 %v2628_v55  ;;  %2031 = vmatpush3.msra.mxu1 %v77_v9 }
  0x51   :  { %217 = vmatmul.mubr.f32.gmra.mxu0 %v2632_v56  ;;  %452 = vmatprep.subr.mxu0 %v2634_v57 }
  0x52   :  { %453 = vmatpush1.msra.mxu0 %v2637_v58  ;;  %222 = vmatprep.mubr.f32.mxu0 %v3487_v0 }
  0x53   :  { %454 = vmatprep.subr.mxu0 %v2640_v59  ;;  %2032 = vmatprep.mubr.f32.mxu1 %v2602_v44  ;;  %v127_v44 = vsub.s32 0, %v126_v43 }
  0x54   :  { %455 = vmatpush1.msra.mxu0 %v2644_v61  ;;  %2044 = vmatprep.subr.mxu1 %v3487_v0 }
  0x55   :  { %223 = vmatmul.mubr.f32.gmra.mxu0 %v2648_v62  ;;  %456 = vmatprep.subr.mxu0 %v2650_v63  ;;  %v128_v60 = vrot.slane %v123_v48, %v127_v44 }
  0x56   :  { %457 = vmatpush1.msra.mxu0 %v2653_v1  ;;  %228 = vmatprep.mubr.f32.mxu0 %v3487_v0 }
  0x57   :  { %458 = vmatprep.subr.mxu0 %v2656_v2  ;;  %2033 = vmatmul.mubr.f32.vlgmr.msra.gmra.mxu1 %v2616_v50 }
  0x58   :  { %459 = vmatpush1.msra.mxu0 %v2660_v4  ;;  %2045 = vmatpush3.msra.mxu1 %v2706_v21 }
  0x59   :  { %229 = vmatmul.mubr.f32.gmra.mxu0 %v2664_v5  ;;  %460 = vmatprep.subr.mxu0 %v2666_v6 }
  0x5a   :  { %461 = vmatpush1.msra.mxu0 %v2669_v7  ;;  %234 = vmatprep.mubr.f32.mxu0 %v3487_v0 }
  0x5b   :  { %462 = vmatprep.subr.mxu0 %v2672_v8  ;;  %2046 = vmatprep.subr.mxu1 %v3487_v0 }
  0x5c   :  { %463 = vmatpush1.msra.mxu0 %v2676_v10  ;;  %2047 = vmatpush3.msra.mxu1 %v2723_v27 }
  0x5d   :  { %235 = vmatmul.mubr.f32.gmra.mxu0 %v72_v11  ;;  %464 = vmatprep.subr.mxu0 %v2680_v12 }
  0x5e   :  { %465 = vmatpush1.msra.mxu0 %v2683_v13  ;;  %240 = vmatprep.mubr.f32.mxu0 %v3487_v0 }
  0x5f   :  { %466 = vmatprep.subr.mxu0 %v2686_v14  ;;  %2048 = vmatprep.subr.mxu1 %v3487_v0 }
  0x60   :  { %467 = vmatpush1.msra.mxu0 %v2689_v15  ;;  %2049 = vmatpush3.msra.mxu1 %v2729_v28 }
  0x61   :  { %241 = vmatmul.mubr.f32.gmra.mxu0 %v73_v16  ;;  %468 = vmatprep.subr.mxu0 %v2693_v17 }
  0x62   :  { %469 = vmatpush1.msra.mxu0 %v2696_v18  ;;  %246 = vmatprep.mubr.f32.mxu0 %v3487_v0 }
  0x63   :  { %470 = vmatprep.subr.mxu0 %v2700_v19  ;;  %2035 = vmatprep.mubr.f32.mxu1 %v2632_v56 }
  0x64   :  { %471 = vmatpush1.msra.mxu0 %v2704_v20  ;;  %2050 = vmatprep.subr.mxu1 %v3487_v0 }
  0x65   :  { %247 = vmatmul.mubr.f32.gmra.mxu0 %v74_v22  ;;  %472 = vmatprep.subr.mxu0 %v2710_v23 }
  0x66   :  { %473 = vmatpush1.msra.mxu0 %v2713_v24  ;;  %508 = vmatprep.mubr.f32.mxu0 %v3487_v0 }
  0x67   :  { %474 = vmatprep.subr.mxu0 %v2717_v25  ;;  %2036 = vmatmul.mubr.f32.gmra.mxu1 %v2648_v62 }
  0x68   :  { %475 = vmatpush1.msra.mxu0 %v2721_v26  ;;  %2051 = vmatpush3.msra.mxu1 %v2735_v29 }
  0x69   :  { %509 = vmatmul.mubr.f32.vlgmr.msra.gmra.mxu0 %v3487_v0  ;;  %2038 = vmatprep.mubr.f32.mxu1 %v2664_v5 }
  0x6a   :  { %2052 = vmatprep.subr.mxu1 %v3487_v0  ;;  %613 = vmatprep.subr.mxu0 %v2604_v45 }
  0x6b   :  { %2053 = vmatpush3.msra.mxu1 %v2740_v30  ;;  %614 = vmatpush1.msra.mxu0 %v2606_v46 }
  0x6c   :  { %2054 = vmatprep.subr.mxu1 %v3487_v0  ;;  %2039 = vmatmul.mubr.f32.gmra.mxu1 %v72_v11 }
  0x6d   :  { %2055 = vmatpush3.msra.mxu1 %v2746_v31  ;;  %2041 = vmatprep.mubr.f32.mxu1 %v73_v16 }
  0x6e   :  { %2056 = vmatprep.subr.mxu1 %v3487_v0  ;;  %615 = vmatprep.subr.mxu0 %v2608_v47 }
  0x6f   :  { %2057 = vmatpush3.msra.mxu1 %v2752_v32  ;;  %616 = vmatpush1.msra.mxu0 %v2612_v49 }
  0x70   :  { %2058 = vmatprep.subr.mxu1 %v3487_v0  ;;  %2042 = vmatmul.mubr.f32.gmra.mxu1 %v74_v22 }
  0x71   :  { %2059 = vmatpush3.msra.mxu1 %v2756_v33  ;;  %2076 = vmatprep.mubr.msk.f32.mxu1 %vm2557_vm0, %v3487_v0 }
  0x72   :  { %2060 = vmatprep.subr.mxu1 %v3487_v0  ;;  %617 = vmatprep.subr.mxu0 %v2618_v51 }
  0x73   :  { %2061 = vmatpush3.msra.mxu1 %v2762_v34  ;;  %618 = vmatpush1.msra.mxu0 %v2621_v52 }
  0x74   :  { %2062 = vmatprep.subr.mxu1 %v3487_v0  ;;  %619 = vmatprep.subr.mxu0 %v2624_v53 }
  0x75   :  { %2063 = vmatpush3.msra.mxu1 %v2768_v35  ;;  %620 = vmatpush1.msra.mxu0 %v2628_v55 }
  0x76   :  { %2064 = vmatprep.subr.mxu1 %v3487_v0  ;;  %621 = vmatprep.subr.mxu0 %v2634_v57 }
  0x77   :  { %2065 = vmatpush3.msra.mxu1 %v2774_v36  ;;  %622 = vmatpush1.msra.mxu0 %v2637_v58 }
  0x78   :  { %2066 = vmatprep.subr.mxu1 %v3487_v0  ;;  %623 = vmatprep.subr.mxu0 %v2640_v59 }
  0x79   :  { %2067 = vmatpush3.msra.mxu1 %v2780_v37  ;;  %624 = vmatpush1.msra.mxu0 %v2644_v61 }
  0x7a   :  { %2068 = vmatprep.subr.mxu1 %v3487_v0  ;;  %625 = vmatprep.subr.mxu0 %v2650_v63 }
  0x7b   :  { %2069 = vmatpush3.msra.mxu1 %v2786_v38  ;;  %626 = vmatpush1.msra.mxu0 %v2653_v1 }
  0x7c   :  { %2070 = vmatprep.subr.mxu1 %v3487_v0  ;;  %627 = vmatprep.subr.mxu0 %v2656_v2 }
  0x7d   :  { %2071 = vmatpush3.msra.mxu1 %v2792_v39  ;;  %628 = vmatpush1.msra.mxu0 %v2660_v4 }
  0x7e   :  { %2072 = vmatprep.subr.mxu1 %v3487_v0  ;;  %629 = vmatprep.subr.mxu0 %v2666_v6 }
  0x7f   :  { %2073 = vmatpush3.msra.mxu1 %v2798_v40  ;;  %630 = vmatpush1.msra.mxu0 %v2669_v7 }
  0x80   :  { %2074 = vmatprep.subr.mxu1 %v3487_v0  ;;  %631 = vmatprep.subr.mxu0 %v2672_v8 }
  0x81   :  { %2075 = vmatpush3.msra.mxu1 %v2804_v41  ;;  %632 = vmatpush1.msra.mxu0 %v2676_v10 }
  0x82   :  { %2077 = vmatmul.mubr.f32.vlgmr.msra.gmra.mxu1 %v3487_v0  ;;  %2079 = vmatprep.subr.mxu1 %v3487_v0 }
  0x83   :  { %2080 = vmatpush3.msra.mxu1 %v2706_v21  ;;  %633 = vmatprep.subr.mxu0 %v2680_v12 }
  0x84   :  { %2081 = vmatprep.subr.mxu1 %v3487_v0  ;;  %634 = vmatpush1.msra.mxu0 %v2683_v13 }
  0x85   :  { %2082 = vmatpush3.msra.mxu1 %v2723_v27  ;;  %635 = vmatprep.subr.mxu0 %v2686_v14 }
  0x86   :  { %2083 = vmatprep.subr.mxu1 %v3487_v0  ;;  %636 = vmatpush1.msra.mxu0 %v2689_v15 }
  0x87   :  { %2084 = vmatpush3.msra.mxu1 %v2729_v28  ;;  %637 = vmatprep.subr.mxu0 %v2693_v17 }
  0x88   :  { %2085 = vmatprep.subr.mxu1 %v3487_v0  ;;  %638 = vmatpush1.msra.mxu0 %v2696_v18 }
  0x89   :  { %2086 = vmatpush3.msra.mxu1 %v2735_v29  ;;  %639 = vmatprep.subr.mxu0 %v2700_v19 }
  0x8a   :  { %2087 = vmatprep.subr.mxu1 %v3487_v0  ;;  %640 = vmatpush1.msra.mxu0 %v2704_v20 }
  0x8b   :  { %2088 = vmatpush3.msra.mxu1 %v2740_v30  ;;  %641 = vmatprep.subr.mxu0 %v2710_v23 }
  0x8c   :  { %2089 = vmatprep.subr.mxu1 %v3487_v0  ;;  %642 = vmatpush1.msra.mxu0 %v2713_v24 }
  0x8d   :  { %2090 = vmatpush3.msra.mxu1 %v2746_v31  ;;  %643 = vmatprep.subr.mxu0 %v2717_v25 }
  0x8e   :  { %2091 = vmatprep.subr.mxu1 %v3487_v0  ;;  %644 = vmatpush1.msra.mxu0 %v2721_v26 }
  0x8f   :  { %2092 = vmatpush3.msra.mxu1 %v2752_v32  ;;  %677 = vmatprep.mubr.f32.mxu0 %v3487_v0 }
  0x90   :  { %2093 = vmatprep.subr.mxu1 %v3487_v0  ;;  %2111 = vmatprep.mubr.msk.f32.mxu1 %vm2557_vm0, %v3487_v0 }
  0x91   :  { %2094 = vmatpush3.msra.mxu1 %v2756_v33  ;;  %783 = vmatprep.subr.mxu0 %v2604_v45 }
  0x92   :  { %2095 = vmatprep.subr.mxu1 %v3487_v0 }
  0x93   :  { %2096 = vmatpush3.msra.mxu1 %v2762_v34 }
  0x94   :  { %2097 = vmatprep.subr.mxu1 %v3487_v0 }
  0x95   :  { %2098 = vmatpush3.msra.mxu1 %v2768_v35 }
  0x96   :  { %2099 = vmatprep.subr.mxu1 %v3487_v0 }
  0x97   :  { %2100 = vmatpush3.msra.mxu1 %v2774_v36 }
  0x98   :  { %2101 = vmatprep.subr.mxu1 %v3487_v0 }
  0x99   :  { %2102 = vmatpush3.msra.mxu1 %v2780_v37 }
  0x9a   :  { %2103 = vmatprep.subr.mxu1 %v3487_v0 }
  0x9b   :  { %2104 = vmatpush3.msra.mxu1 %v2786_v38 }
  0x9c   :  { %2105 = vmatprep.subr.mxu1 %v3487_v0 }
  0x9d   :  { %2106 = vmatpush3.msra.mxu1 %v2792_v39 }
  0x9e   :  { %2107 = vmatprep.subr.mxu1 %v3487_v0 }
  0x9f   :  { %2108 = vmatpush3.msra.mxu1 %v2798_v40 }
  0xa0   :  { %2109 = vmatprep.subr.mxu1 %v3487_v0 }
  0xa1   :  { %2110 = vmatpush3.msra.mxu1 %v2804_v41 }
  0xa2   :  { %2114 = vmatprep.subr.mxu1 %v3487_v0 }
 0x109   :  { %v206_v50 = vpop.f32.mrf.mxu0 }
 0x10b   :  { %v208_v56 = vpop.f32.mrf.mxu0 }
 0x10d   :  { %v212_v62 = vpop.f32.mrf.mxu0 }
 0x10e   :  { %v2866_v5 = vadd.f32 %v212_v62, %v128_v60 }
 0x10f   :  { %v214_v9 = vpop.f32.mrf.mxu0 }
 0x110   :  { %3512 = vst [vmem:[#allocation20_spill] sm:$0xff] %v2866_v5  ;;  %v2868_v11 = vadd.f32 %v214_v9, %v132_v3  ;;  %v135_v9 = vsub.s32 2, %v126_v43 }
 0x111   :  { %v218_v16 = vpop.f32.mrf.mxu0 }
 0x112   :  { %3513 = vst [vmem:[#allocation21_spill] sm:$0xff] %v2868_v11  ;;  %v2870_v22 = vadd.f32 %v218_v16, %v128_v60 }
 0x113   :  { %v220_v42 = vpop.f32.mrf.mxu0 }
 0x114   :  { %3514 = vst [vmem:[#allocation22_spill] sm:$0xff] %v2870_v22  ;;  %v2872_v0 = vadd.f32 %v220_v42, %v132_v3  ;;  %v136_v42 = vrot.slane %v123_v48, %v135_v9 }
 0x115   :  { %v224_v45 = vpop.f32.mrf.mxu0 }
 0x116   :  { %3515 = vst [vmem:[#allocation23_spill] sm:$0xff] %v2872_v0  ;;  %v2874_v41 = vadd.f32 %v224_v45, %v128_v60 }
 0x117   :  { %v226_v26 = vpop.f32.mrf.mxu0 }
 0x118   :  { %3516 = vst [vmem:[#allocation24_spill] sm:$0xff] %v2874_v41  ;;  %v2876_v25 = vadd.f32 %v226_v26, %v132_v3  ;;  %v2034_v26 = vpop.f32.mrf.mxu1 }
 0x119   :  { %v230_v44 = vpop.f32.mrf.mxu0 }
 0x11a   :  { %3517 = vst [vmem:[#allocation25_spill] sm:$0xff] %v2876_v25  ;;  %v2878_v40 = vadd.f32 %v230_v44, %v128_v60  ;;  %v2890_v44 = vadd.f32 %v2034_v26, %v136_v42 }
 0x11b   :  { %v232_v54 = vpop.f32.mrf.mxu0 }
 0x11c   :  { %3518 = vst [vmem:[#allocation26_spill] sm:$0xff] %v2878_v40  ;;  %v2880_v62 = vadd.f32 %v232_v54, %v132_v3  ;;  %3524 = vst [vmem:[#allocation32_spill] sm:$0xff] %v2890_v44 }
 0x11d   :  { %v236_v11 = vpop.f32.mrf.mxu0 }
 0x11e   :  { %3519 = vst [vmem:[#allocation27_spill] sm:$0xff] %v2880_v62  ;;  %v2882_v5 = vadd.f32 %v236_v11, %v128_v60  ;;  %v207_v62 = vadd.f32 %v206_v50, %v128_v60  ;;  %v209_v50 = vadd.f32 %v208_v56, %v132_v3 }
 0x11f   :  { %v238_v16 = vpop.f32.mrf.mxu0 }
 0x120   :  { %3520 = vst [vmem:[#allocation28_spill] sm:$0xff] %v2882_v5  ;;  %v2884_v22 = vadd.f32 %v238_v16, %v132_v3  ;;  %v319_v16 = vpop.f32.mrf.mxu1 }
 0x121   :  { %v242_v0 = vpop.f32.mrf.mxu0 }
 0x122   :  { %3521 = vst [vmem:[#allocation29_spill] sm:$0xff] %v2884_v22  ;;  %v2886_v45 = vadd.f32 %v242_v0, %v128_v60 }
 0x123   :  { %v244_v41 = vpop.f32.mrf.mxu0 }
 0x124   :  { %3522 = vst [vmem:[#allocation30_spill] sm:$0xff] %v2886_v45  ;;  %v2888_v25 = vadd.f32 %v244_v41, %v132_v3 }
 0x125   :  { %v248_v40 = vpop.f32.mrf.mxu0 }
 0x126   :  { %3523 = vst [vmem:[#allocation31_spill] sm:$0xff] %v2888_v25  ;;  %v2892_v54 = vadd.f32 %v248_v40, %v128_v60 }
 0x127   :  { %v250_v43 = vpop.f32.mrf.mxu0  ;;  %v2037_v48 = vpop.f32.mrf.mxu1 }
 0x128   :  { %3525 = vst [vmem:[#allocation33_spill] sm:$0xff] %v2892_v54  ;;  %v2894_v11 = vadd.f32 %v250_v43, %v132_v3  ;;  %v2896_v0 = vadd.f32 %v2037_v48, %v136_v42 }
 0x129   :  { %v510_v5 = vpop.f32.mrf.mxu0  ;;  %v329_v45 = vpop.f32.mrf.mxu1 }
 0x12a   :  { %3526 = vst [vmem:[#allocation34_spill] sm:$0xff] %v2894_v11  ;;  %v585_v22 = vadd.f32 %v510_v5, %v207_v62  ;;  %3527 = vst [vmem:[#allocation35_spill] sm:$0xff] %v2896_v0  ;;  %v2898_v41 = vadd.f32 %v329_v45, %v136_v42  ;;  %v2911_v45 = vld [vmem:[%s3485_s4] ss:$0 sm:$0xff] }
 0x12b   :  { %v512_v54 = vpop.f32.mrf.mxu0 }
 0x12c   :  { %v1824_v9 = vmul.f32 -1.442695, %v585_v22  ;;  %3528 = vst [vmem:[#allocation36_spill] sm:$0xff] %v2898_v41  ;;  %v2040_v26 = vpop.f32.mrf.mxu1  ;;  %v586_v5 = vadd.f32 %v512_v54, %v209_v50  ;;  %v320_v54 = vadd.f32 %v319_v16, %v136_v42  ;;  %v3534_v16 = vld [vmem:[#allocation18_spill] sm:$0xff] }
 0x12d   :  { %v2900_v25 = vadd.f32 %v2040_v26, %v136_v42 }
 0x12e   :  { %2334 = vpow2.f32 %v1824_v9  ;;  %v339_v40 = vpop.f32.mrf.mxu1  ;;  %v1825_v48 = vmul.f32 -1.442695, %v586_v5 }
 0x12f   :  { %3529 = vst [vmem:[#allocation37_spill] sm:$0xff] %v2900_v25  ;;  %v2902_v44 = vadd.f32 %v339_v40, %v136_v42 }
 0x130   :  { %v2043_v60 = vpop.f32.mrf.mxu1  ;;  %2336 = vpow2.f32 %v1825_v48 }
 0x131   :  { %3530 = vst [vmem:[#allocation38_spill] sm:$0xff] %v2902_v44  ;;  %v2904_v43 = vadd.f32 %v2043_v60, %v136_v42 }
 0x132   :  { %v349_v62 = vpop.f32.mrf.mxu1 }
 0x133   :  { %3531 = vst [vmem:[#allocation39_spill] sm:$0xff] %v2904_v43  ;;  %v2906_v22 = vadd.f32 %v349_v62, %v136_v42  ;;  %v3533_v42 = vmov 0.0  }
 0x135   :  { %3532 = vst [vmem:[#allocation40_spill] sm:$0xff] %v2906_v22 }
 0x13b   :  { %v2335_v11 = vpop.eup %2334 }
 0x13c   :  { %v593_v9 = vadd.f32 1.0, %v2335_v11 }
 0x13d   :  { %v2337_v3 = vpop.eup %2336 }
 0x13e   :  { %2338 = vrcp.f32 %v593_v9  ;;  %v594_v62 = vadd.f32 1.0, %v2337_v3 }
 0x142   :  { %v581_v26 = vpop.f32.mrf.mxu1 }
 0x143   :  { %v599_v56 = vadd.f32 %v2911_v45, %v581_v26  ;;  %v3536_v26 = vld [vmem:[#allocation17_spill] sm:$0xff] }
 0x144   :  { %v2078_v40 = vpop.f32.mrf.mxu1 }
 0x145   :  { %v3537_v40 = vld [vmem:[#allocation19_spill] sm:$0xff] }
 0x14b   :  { %v2339_v60 = vpop.eup %2338 }
 0x14c   :  { %v600_v50 = vmul.f32 %v2339_v60, %v599_v56  ;;  %v3538_v56 = vld [vmem:[#allocation14_spill] sm:$0xff] }
 0x14e   :  { %v601_v43 = vadd.f32 %v600_v50, %v320_v54  ;;  %v3539_v54 = vld [vmem:[#allocation20_spill] sm:$0xff] }
 0x150   :  { %2340 = vtanh.f32 %v601_v43  ;;  %v3535_v43 = vld [vmem:[#allocation16_spill] sm:$0xff] }
 0x151   :  { %2342 = vrcp.f32 %v594_v62 }
 0x15d   :  { %v2341_v11 = vpop.eup %2340 }
 0x15e   :  { %v603_v5 = vsub.f32 0.0, %v2341_v11  ;;  %v2343_v48 = vpop.eup %2342 }
 0x160   :  { %v604_v9 = vmul.f32 %v2343_v48, %v603_v5  ;;  %v3540_v48 = vld [vmem:[#allocation21_spill] sm:$0xff] }
 0x162   :  { %v2914_v22 = vadd.f32 %v2341_v11, %v604_v9 }
 0x164   :  { %606 = vst [vmem:[#allocation10] sm:$0xff] %v2914_v22  ;;  %678 = vmatmul.mubr.f32.vlgmr.msra.gmra.mxu0 %v2914_v22  ;;  %2112 = vmatmul.mubr.f32.vlgmr.msra.gmra.mxu1 %v2914_v22 }
 0x165   :  { %784 = vmatpush1.msra.mxu0 %v2606_v46  ;;  %2115 = vmatpush3.msra.mxu1 %v2706_v21 }
 0x166   :  { %785 = vmatprep.subr.mxu0 %v2608_v47  ;;  %2116 = vmatprep.subr.mxu1 %v3533_v42 }
 0x167   :  { %786 = vmatpush1.msra.mxu0 %v2612_v49  ;;  %2117 = vmatpush3.msra.mxu1 %v2723_v27 }
 0x168   :  { %787 = vmatprep.subr.mxu0 %v2618_v51  ;;  %2118 = vmatprep.subr.mxu1 %v3533_v42 }
 0x169   :  { %788 = vmatpush1.msra.mxu0 %v2621_v52  ;;  %2119 = vmatpush3.msra.mxu1 %v2729_v28 }
 0x16a   :  { %789 = vmatprep.subr.mxu0 %v2624_v53  ;;  %2120 = vmatprep.subr.mxu1 %v3533_v42 }
 0x16b   :  { %790 = vmatpush1.msra.mxu0 %v2628_v55  ;;  %2121 = vmatpush3.msra.mxu1 %v2735_v29 }
 0x16c   :  { %791 = vmatprep.subr.mxu0 %v2634_v57  ;;  %2122 = vmatprep.subr.mxu1 %v3533_v42 }
 0x16d   :  { %792 = vmatpush1.msra.mxu0 %v2637_v58  ;;  %2123 = vmatpush3.msra.mxu1 %v2740_v30 }
 0x16e   :  { %793 = vmatprep.subr.mxu0 %v2640_v59  ;;  %2124 = vmatprep.subr.mxu1 %v3533_v42 }
 0x16f   :  { %794 = vmatpush1.msra.mxu0 %v2644_v61  ;;  %2125 = vmatpush3.msra.mxu1 %v2746_v31 }
 0x170   :  { %795 = vmatprep.subr.mxu0 %v2650_v63  ;;  %2126 = vmatprep.subr.mxu1 %v3533_v42 }
 0x171   :  { %796 = vmatpush1.msra.mxu0 %v2653_v1  ;;  %2127 = vmatpush3.msra.mxu1 %v2752_v32 }
 0x172   :  { %797 = vmatprep.subr.mxu0 %v2656_v2  ;;  %2128 = vmatprep.subr.mxu1 %v3533_v42 }
 0x173   :  { %798 = vmatpush1.msra.mxu0 %v2660_v4  ;;  %2129 = vmatpush3.msra.mxu1 %v2756_v33 }
 0x174   :  { %799 = vmatprep.subr.mxu0 %v2666_v6  ;;  %2130 = vmatprep.subr.mxu1 %v3533_v42 }
 0x175   :  { %800 = vmatpush1.msra.mxu0 %v2669_v7  ;;  %2131 = vmatpush3.msra.mxu1 %v2762_v34 }
 0x176   :  { %801 = vmatprep.subr.mxu0 %v2672_v8  ;;  %2132 = vmatprep.subr.mxu1 %v3533_v42 }
 0x177   :  { %802 = vmatpush1.msra.mxu0 %v2676_v10  ;;  %2133 = vmatpush3.msra.mxu1 %v2768_v35 }
 0x178   :  { %803 = vmatprep.subr.mxu0 %v2680_v12  ;;  %2134 = vmatprep.subr.mxu1 %v3533_v42 }
 0x179   :  { %804 = vmatpush1.msra.mxu0 %v2683_v13  ;;  %2135 = vmatpush3.msra.mxu1 %v2774_v36 }
 0x17a   :  { %805 = vmatprep.subr.mxu0 %v2686_v14  ;;  %2136 = vmatprep.subr.mxu1 %v3533_v42 }
 0x17b   :  { %806 = vmatpush1.msra.mxu0 %v2689_v15  ;;  %2137 = vmatpush3.msra.mxu1 %v2780_v37 }
 0x17c   :  { %807 = vmatprep.subr.mxu0 %v2693_v17  ;;  %2138 = vmatprep.subr.mxu1 %v3533_v42 }
 0x17d   :  { %808 = vmatpush1.msra.mxu0 %v2696_v18  ;;  %2139 = vmatpush3.msra.mxu1 %v2786_v38 }
 0x17e   :  { %809 = vmatprep.subr.mxu0 %v2700_v19  ;;  %2140 = vmatprep.subr.mxu1 %v3533_v42 }
 0x17f   :  { %810 = vmatpush1.msra.mxu0 %v2704_v20  ;;  %2141 = vmatpush3.msra.mxu1 %v2792_v39 }
 0x180   :  { %811 = vmatprep.subr.mxu0 %v2710_v23  ;;  %2142 = vmatprep.subr.mxu1 %v3533_v42 }
 0x181   :  { %812 = vmatpush1.msra.mxu0 %v2713_v24  ;;  %2143 = vmatpush3.msra.mxu1 %v3534_v16 }
 0x182   :  { %813 = vmatprep.subr.mxu0 %v3535_v43  ;;  %2144 = vmatprep.subr.mxu1 %v3533_v42  ;;  %v3541_v43 = vld [vmem:[#allocation32_spill] sm:$0xff] }
 0x183   :  { %814 = vmatpush1.msra.mxu0 %v3536_v26  ;;  %847 = vmatprep.mubr.f32.mxu0 %v3533_v42 }
 0x184   :  { %2145 = vmatpush3.msra.mxu1 %v3537_v40  ;;  %2146 = vmatprep.mubr.msk.f32.mxu1 %vm2557_vm0, %v3533_v42 }
 0x185   :  { %953 = vmatprep.subr.mxu0 %v3538_v56  ;;  %2149 = vmatprep.subr.mxu1 %v3533_v42 }
 0x224   :  { %v679_v3 = vpop.f32.mrf.mxu0  ;;  %v750_v60 = vpop.f32.mrf.mxu1 }
 0x225   :  { %v754_v50 = vadd.f32 %v679_v3, %v3539_v54  ;;  %v768_v56 = vadd.f32 %v2911_v45, %v750_v60 }
 0x226   :  { %v2113_v62 = vpop.f32.mrf.mxu1  ;;  %v681_v5 = vpop.f32.mrf.mxu0 }
 0x227   :  { %v1826_v11 = vmul.f32 -1.442695, %v754_v50  ;;  %v755_v9 = vadd.f32 %v681_v5, %v3540_v48  ;;  %v3549_v48 = vld [vmem:[#allocation23_spill] sm:$0xff] }
 0x229   :  { %2344 = vpow2.f32 %v1826_v11  ;;  %v1827_v25 = vmul.f32 -1.442695, %v755_v9 }
 0x22b   :  { %2346 = vpow2.f32 %v1827_v25  ;;  %v3543_v25 = vld [vmem:[#allocation18_spill] sm:$0xff] }
 0x236   :  { %v2345_v44 = vpop.eup %2344 }
 0x237   :  { %v762_v0 = vadd.f32 1.0, %v2345_v44  ;;  %v3544_v44 = vld [vmem:[#allocation16_spill] sm:$0xff] }
 0x238   :  { %v2347_v41 = vpop.eup %2346 }
 0x239   :  { %2348 = vrcp.f32 %v762_v0  ;;  %v763_v24 = vadd.f32 1.0, %v2347_v41  ;;  %v3545_v0 = vld [vmem:[#allocation17_spill] sm:$0xff]  ;;  %v3546_v41 = vld [vmem:[#allocation19_spill] sm:$0xff] }
 0x246   :  { %v2349_v40 = vpop.eup %2348 }
 0x247   :  { %v769_v26 = vmul.f32 %v2349_v40, %v768_v56 }
 0x249   :  { %v770_v16 = vadd.f32 %v769_v26, %v3541_v43  ;;  %v3548_v26 = vld [vmem:[#allocation22_spill] sm:$0xff] }
 0x24b   :  { %2350 = vtanh.f32 %v770_v16 }
 0x24c   :  { %2352 = vrcp.f32 %v763_v24  ;;  %v3542_v24 = vld [vmem:[#allocation15_spill] sm:$0xff] }
 0x258   :  { %v2351_v3 = vpop.eup %2350 }
 0x259   :  { %v772_v54 = vsub.f32 %v2914_v22, %v2351_v3  ;;  %v2353_v50 = vpop.eup %2352  ;;  %v3547_v22 = vld [vmem:[#allocation14_spill] sm:$0xff] }
 0x25b   :  { %v773_v62 = vmul.f32 %v2353_v50, %v772_v54 }
 0x25d   :  { %v2991_v11 = vadd.f32 %v2351_v3, %v773_v62 }
 0x25f   :  { %776 = vst [vmem:[#allocation10 + $0x8] sm:$0xff] %v2991_v11  ;;  %848 = vmatmul.mubr.f32.vlgmr.msra.gmra.mxu0 %v2991_v11  ;;  %2147 = vmatmul.mubr.f32.vlgmr.msra.gmra.mxu1 %v2991_v11 }
 0x260   :  { %954 = vmatpush1.msra.mxu0 %v2606_v46  ;;  %2150 = vmatpush3.msra.mxu1 %v2706_v21 }
 0x261   :  { %955 = vmatprep.subr.mxu0 %v2608_v47  ;;  %2151 = vmatprep.subr.mxu1 %v3533_v42 }
 0x262   :  { %956 = vmatpush1.msra.mxu0 %v2612_v49  ;;  %2152 = vmatpush3.msra.mxu1 %v2723_v27 }
 0x263   :  { %957 = vmatprep.subr.mxu0 %v2618_v51  ;;  %2153 = vmatprep.subr.mxu1 %v3533_v42 }
 0x264   :  { %958 = vmatpush1.msra.mxu0 %v2621_v52  ;;  %2154 = vmatpush3.msra.mxu1 %v2729_v28 }
 0x265   :  { %959 = vmatprep.subr.mxu0 %v2624_v53  ;;  %2155 = vmatprep.subr.mxu1 %v3533_v42 }
 0x266   :  { %960 = vmatpush1.msra.mxu0 %v2628_v55  ;;  %2156 = vmatpush3.msra.mxu1 %v2735_v29 }
 0x267   :  { %961 = vmatprep.subr.mxu0 %v2634_v57  ;;  %2157 = vmatprep.subr.mxu1 %v3533_v42 }
 0x268   :  { %962 = vmatpush1.msra.mxu0 %v2637_v58  ;;  %2158 = vmatpush3.msra.mxu1 %v2740_v30 }
 0x269   :  { %963 = vmatprep.subr.mxu0 %v2640_v59  ;;  %2159 = vmatprep.subr.mxu1 %v3533_v42 }
 0x26a   :  { %964 = vmatpush1.msra.mxu0 %v2644_v61  ;;  %2160 = vmatpush3.msra.mxu1 %v2746_v31 }
 0x26b   :  { %965 = vmatprep.subr.mxu0 %v2650_v63  ;;  %2161 = vmatprep.subr.mxu1 %v3533_v42 }
 0x26c   :  { %966 = vmatpush1.msra.mxu0 %v2653_v1  ;;  %2162 = vmatpush3.msra.mxu1 %v2752_v32 }
 0x26d   :  { %967 = vmatprep.subr.mxu0 %v2656_v2  ;;  %2163 = vmatprep.subr.mxu1 %v3533_v42 }
 0x26e   :  { %968 = vmatpush1.msra.mxu0 %v2660_v4  ;;  %2164 = vmatpush3.msra.mxu1 %v2756_v33 }
 0x26f   :  { %969 = vmatprep.subr.mxu0 %v2666_v6  ;;  %2165 = vmatprep.subr.mxu1 %v3533_v42 }
 0x270   :  { %970 = vmatpush1.msra.mxu0 %v2669_v7  ;;  %2166 = vmatpush3.msra.mxu1 %v2762_v34 }
 0x271   :  { %971 = vmatprep.subr.mxu0 %v2672_v8  ;;  %2167 = vmatprep.subr.mxu1 %v3533_v42 }
 0x272   :  { %972 = vmatpush1.msra.mxu0 %v2676_v10  ;;  %2168 = vmatpush3.msra.mxu1 %v2768_v35 }
 0x273   :  { %973 = vmatprep.subr.mxu0 %v2680_v12  ;;  %2169 = vmatprep.subr.mxu1 %v3533_v42 }
 0x274   :  { %974 = vmatpush1.msra.mxu0 %v2683_v13  ;;  %2170 = vmatpush3.msra.mxu1 %v2774_v36 }
 0x275   :  { %975 = vmatprep.subr.mxu0 %v2686_v14  ;;  %2171 = vmatprep.subr.mxu1 %v3533_v42 }
 0x276   :  { %976 = vmatpush1.msra.mxu0 %v2689_v15  ;;  %2172 = vmatpush3.msra.mxu1 %v2780_v37 }
 0x277   :  { %977 = vmatprep.subr.mxu0 %v2693_v17  ;;  %2173 = vmatprep.subr.mxu1 %v3533_v42 }
 0x278   :  { %978 = vmatpush1.msra.mxu0 %v2696_v18  ;;  %2174 = vmatpush3.msra.mxu1 %v2786_v38 }
 0x279   :  { %979 = vmatprep.subr.mxu0 %v2700_v19  ;;  %2175 = vmatprep.subr.mxu1 %v3533_v42 }
 0x27a   :  { %980 = vmatpush1.msra.mxu0 %v2704_v20  ;;  %2176 = vmatpush3.msra.mxu1 %v2792_v39 }
 0x27b   :  { %981 = vmatprep.subr.mxu0 %v2710_v23  ;;  %2177 = vmatprep.subr.mxu1 %v3533_v42 }
 0x27c   :  { %982 = vmatpush1.msra.mxu0 %v3542_v24  ;;  %2178 = vmatpush3.msra.mxu1 %v3543_v25 }
 0x27d   :  { %983 = vmatprep.subr.mxu0 %v3544_v44  ;;  %2179 = vmatprep.subr.mxu1 %v3533_v42  ;;  %v3550_v44 = vld [vmem:[#allocation36_spill] sm:$0xff] }
 0x27e   :  { %984 = vmatpush1.msra.mxu0 %v3545_v0  ;;  %1017 = vmatprep.mubr.f32.mxu0 %v3533_v42 }
 0x27f   :  { %2180 = vmatpush3.msra.mxu1 %v3546_v41  ;;  %2181 = vmatprep.mubr.msk.f32.mxu1 %vm2557_vm0, %v3533_v42 }
 0x280   :  { %1123 = vmatprep.subr.mxu0 %v3547_v22  ;;  %2184 = vmatprep.subr.mxu1 %v3533_v42 }
 0x31f   :  { %v849_v16 = vpop.f32.mrf.mxu0  ;;  %v920_v43 = vpop.f32.mrf.mxu1 }
 0x320   :  { %v924_v40 = vadd.f32 %v849_v16, %v3548_v26  ;;  %v938_v22 = vadd.f32 %v2911_v45, %v920_v43  ;;  %v3170_v43 = vld [vmem:[#allocation9 + $0x138] sm:$0xff] }
 0x321   :  { %v2148_v56 = vpop.f32.mrf.mxu1  ;;  %v851_v5 = vpop.f32.mrf.mxu0 }
 0x322   :  { %v1828_v60 = vmul.f32 -1.442695, %v924_v40  ;;  %v925_v9 = vadd.f32 %v851_v5, %v3549_v48  ;;  %v3174_v5 = vld [vmem:[#allocation9 + $0x128] sm:$0xff]  ;;  %v3178_v48 = vld [vmem:[#allocation9 + $0x120] sm:$0xff] }
 0x324   :  { %2354 = vpow2.f32 %v1828_v60  ;;  %v1829_v3 = vmul.f32 -1.442695, %v925_v9  ;;  %v3186_v9 = vld [vmem:[#allocation9 + $0x108] sm:$0xff] }
 0x326   :  { %2356 = vpow2.f32 %v1829_v3  ;;  %v3194_v3 = vld [vmem:[#allocation9 + $0xf0] sm:$0xff] }
 0x331   :  { %v2355_v54 = vpop.eup %2354 }
 0x332   :  { %v932_v50 = vadd.f32 1.0, %v2355_v54  ;;  %v3202_v54 = vld [vmem:[#allocation9 + $0xd8] sm:$0xff] }
 0x333   :  { %v2357_v62 = vpop.eup %2356 }
 0x334   :  { %2358 = vrcp.f32 %v932_v50  ;;  %v933_v24 = vadd.f32 1.0, %v2357_v62  ;;  %v3210_v50 = vld [vmem:[#allocation9 + $0xc0] sm:$0xff]  ;;  %v3218_v62 = vld [vmem:[#allocation9 + $0xa8] sm:$0xff] }
 0x341   :  { %v2359_v41 = vpop.eup %2358 }
 0x342   :  { %v939_v0 = vmul.f32 %v2359_v41, %v938_v22  ;;  %v3166_v41 = vld [vmem:[#allocation9 + $0x140] sm:$0xff]  ;;  %v3226_v22 = vld [vmem:[#allocation9 + $0x90] sm:$0xff] }
 0x344   :  { %v940_v25 = vadd.f32 %v939_v0, %v3550_v44  ;;  %v3158_v44 = vld [vmem:[#allocation9 + $0x158] sm:$0xff]  ;;  %v3162_v0 = vld [vmem:[#allocation9 + $0x150] sm:$0xff] }
 0x346   :  { %2360 = vtanh.f32 %v940_v25  ;;  %v3155_v25 = vld [vmem:[#allocation9 + $0x178] sm:$0xff] }
 0x347   :  { %2362 = vrcp.f32 %v933_v24  ;;  %v3152_v24 = vld [vmem:[#allocation9 + $0x168] sm:$0xff] }
 0x353   :  { %v2361_v16 = vpop.eup %2360 }
 0x354   :  { %v942_v26 = vsub.f32 %v2991_v11, %v2361_v16  ;;  %v2363_v40 = vpop.eup %2362 }
 0x356   :  { %v943_v56 = vmul.f32 %v2363_v40, %v942_v26  ;;  %v3242_v26 = vld [vmem:[#allocation9 + $0x60] sm:$0xff]  ;;  %v3250_v40 = vld [vmem:[#allocation9 + $0x48] sm:$0xff] }
 0x358   :  { %v3068_v60 = vadd.f32 %v2361_v16, %v943_v56  ;;  %v3234_v16 = vld [vmem:[#allocation9 + $0x78] sm:$0xff]  ;;  %v3258_v56 = vld [vmem:[#allocation9 + $0x30] sm:$0xff] }
 0x35a   :  { %946 = vst [vmem:[#allocation10 + $0x10] sm:$0xff] %v3068_v60  ;;  %1018 = vmatmul.mubr.f32.vlgmr.msra.gmra.mxu0 %v3068_v60  ;;  %2182 = vmatmul.mubr.f32.vlgmr.msra.gmra.mxu1 %v3068_v60 }
 0x35b   :  { %1124 = vmatpush1.msra.mxu0 %v2606_v46  ;;  %2185 = vmatpush3.msra.mxu1 %v2706_v21  ;;  %v3551_v46 = vld [vmem:[#allocation15_spill] sm:$0xff] }
 0x35c   :  { %1125 = vmatprep.subr.mxu0 %v2608_v47  ;;  %2186 = vmatprep.subr.mxu1 %v3533_v42  ;;  %v3552_v47 = vld [vmem:[#allocation18_spill] sm:$0xff] }
 0x35d   :  { %1126 = vmatpush1.msra.mxu0 %v2612_v49  ;;  %2187 = vmatpush3.msra.mxu1 %v2723_v27  ;;  %v3553_v49 = vld [vmem:[#allocation16_spill] sm:$0xff] }
 0x35e   :  { %1127 = vmatprep.subr.mxu0 %v2618_v51  ;;  %2188 = vmatprep.subr.mxu1 %v3533_v42  ;;  %v3554_v51 = vld [vmem:[#allocation17_spill] sm:$0xff] }
 0x35f   :  { %1128 = vmatpush1.msra.mxu0 %v2621_v52  ;;  %2189 = vmatpush3.msra.mxu1 %v2729_v28  ;;  %v3555_v52 = vld [vmem:[#allocation19_spill] sm:$0xff] }
 0x360   :  { %1129 = vmatprep.subr.mxu0 %v2624_v53  ;;  %2190 = vmatprep.subr.mxu1 %v3533_v42  ;;  %v3138_v53 = vld [vmem:[#allocation9 + $0x170] sm:$0xff] }
 0x361   :  { %1130 = vmatpush1.msra.mxu0 %v2628_v55  ;;  %2191 = vmatpush3.msra.mxu1 %v2735_v29 }
 0x362   :  { %1131 = vmatprep.subr.mxu0 %v2634_v57  ;;  %2192 = vmatprep.subr.mxu1 %v3533_v42 }
 0x363   :  { %1132 = vmatpush1.msra.mxu0 %v2637_v58  ;;  %2193 = vmatpush3.msra.mxu1 %v2740_v30  ;;  %v3556_v58 = vld [vmem:[#allocation24_spill] sm:$0xff] }
 0x364   :  { %1133 = vmatprep.subr.mxu0 %v2640_v59  ;;  %2194 = vmatprep.subr.mxu1 %v3533_v42 }
 0x365   :  { %1134 = vmatpush1.msra.mxu0 %v2644_v61  ;;  %2195 = vmatpush3.msra.mxu1 %v2746_v31 }
 0x366   :  { %1135 = vmatprep.subr.mxu0 %v2650_v63  ;;  %2196 = vmatprep.subr.mxu1 %v3533_v42 }
 0x367   :  { %1136 = vmatpush1.msra.mxu0 %v2653_v1  ;;  %2197 = vmatpush3.msra.mxu1 %v2752_v32 }
 0x368   :  { %1137 = vmatprep.subr.mxu0 %v2656_v2  ;;  %2198 = vmatprep.subr.mxu1 %v3533_v42  ;;  %v3557_v2 = vld [vmem:[#allocation25_spill] sm:$0xff] }
 0x369   :  { %1138 = vmatpush1.msra.mxu0 %v2660_v4  ;;  %2199 = vmatpush3.msra.mxu1 %v2756_v33 }
 0x36a   :  { %1139 = vmatprep.subr.mxu0 %v2666_v6  ;;  %2200 = vmatprep.subr.mxu1 %v3533_v42 }
 0x36b   :  { %1140 = vmatpush1.msra.mxu0 %v2669_v7  ;;  %2201 = vmatpush3.msra.mxu1 %v2762_v34 }
 0x36c   :  { %1141 = vmatprep.subr.mxu0 %v2672_v8  ;;  %2202 = vmatprep.subr.mxu1 %v3533_v42 }
 0x36d   :  { %1142 = vmatpush1.msra.mxu0 %v2676_v10  ;;  %2203 = vmatpush3.msra.mxu1 %v2768_v35 }
 0x36e   :  { %1143 = vmatprep.subr.mxu0 %v2680_v12  ;;  %2204 = vmatprep.subr.mxu1 %v3533_v42 }
 0x36f   :  { %1144 = vmatpush1.msra.mxu0 %v2683_v13  ;;  %2205 = vmatpush3.msra.mxu1 %v2774_v36 }
 0x370   :  { %1145 = vmatprep.subr.mxu0 %v2686_v14  ;;  %2206 = vmatprep.subr.mxu1 %v3533_v42 }
 0x371   :  { %1146 = vmatpush1.msra.mxu0 %v2689_v15  ;;  %2207 = vmatpush3.msra.mxu1 %v2780_v37  ;;  %v3558_v15 = vld [vmem:[#allocation35_spill] sm:$0xff] }
 0x372   :  { %1147 = vmatprep.subr.mxu0 %v2693_v17  ;;  %2208 = vmatprep.subr.mxu1 %v3533_v42 }
 0x373   :  { %1148 = vmatpush1.msra.mxu0 %v2696_v18  ;;  %2209 = vmatpush3.msra.mxu1 %v2786_v38 }
 0x374   :  { %1149 = vmatprep.subr.mxu0 %v2700_v19  ;;  %2210 = vmatprep.subr.mxu1 %v3533_v42 }
 0x375   :  { %1150 = vmatpush1.msra.mxu0 %v2704_v20  ;;  %2211 = vmatpush3.msra.mxu1 %v2792_v39 }
 0x376   :  { %1151 = vmatprep.subr.mxu0 %v2710_v23  ;;  %2212 = vmatprep.subr.mxu1 %v3533_v42 }
 0x377   :  { %1152 = vmatpush1.msra.mxu0 %v3551_v46  ;;  %2213 = vmatpush3.msra.mxu1 %v3552_v47  ;;  %v3274_v46 = vld [vmem:[#allocation9] sm:$0xff] }
 0x378   :  { %1153 = vmatprep.subr.mxu0 %v3553_v49  ;;  %2214 = vmatprep.subr.mxu1 %v3533_v42  ;;  %3561 = vst [vmem:[#allocation32_spill] sm:$0xff] %v3274_v46  ;;  %v3562_v49 = vld [vmem:[#allocation26_spill] sm:$0xff] }
 0x379   :  { %1154 = vmatpush1.msra.mxu0 %v3554_v51  ;;  %1187 = vmatprep.mubr.f32.mxu0 %v3533_v42 }
 0x37a   :  { %2215 = vmatpush3.msra.mxu1 %v3555_v52  ;;  %2216 = vmatprep.mubr.msk.f32.mxu1 %vm2557_vm0, %v3533_v42 }
 0x37b   :  { %1293 = vmatprep.subr.mxu0 %v3138_v53  ;;  %2219 = vmatprep.subr.mxu1 %v3533_v42 }
 0x41a   :  { %v1019_v55 = vpop.f32.mrf.mxu0  ;;  %v1090_v57 = vpop.f32.mrf.mxu1 }
 0x41b   :  { %v1094_v59 = vadd.f32 %v1019_v55, %v3556_v58  ;;  %v1108_v12 = vadd.f32 %v2911_v45, %v1090_v57 }
 0x41c   :  { %v2183_v61 = vpop.f32.mrf.mxu1  ;;  %v1021_v1 = vpop.f32.mrf.mxu0 }
 0x41d   :  { %v1830_v63 = vmul.f32 -1.442695, %v1094_v59  ;;  %v1095_v4 = vadd.f32 %v1021_v1, %v3557_v2  ;;  %v3563_v59 = vld [vmem:[#allocation27_spill] sm:$0xff] }
 0x41f   :  { %2364 = vpow2.f32 %v1830_v63  ;;  %v1831_v6 = vmul.f32 -1.442695, %v1095_v4 }
 0x421   :  { %2366 = vpow2.f32 %v1831_v6 }
 0x42c   :  { %v2365_v7 = vpop.eup %2364 }
 0x42d   :  { %v1102_v8 = vadd.f32 1.0, %v2365_v7 }
 0x42e   :  { %v2367_v10 = vpop.eup %2366 }
 0x42f   :  { %2368 = vrcp.f32 %v1102_v8  ;;  %v1103_v18 = vadd.f32 1.0, %v2367_v10  ;;  %v3564_v8 = vld [vmem:[#allocation38_spill] sm:$0xff] }
 0x43c   :  { %v2369_v13 = vpop.eup %2368 }
 0x43d   :  { %v1109_v14 = vmul.f32 %v2369_v13, %v1108_v12 }
 0x43f   :  { %v1110_v17 = vadd.f32 %v1109_v14, %v3558_v15 }
 0x441   :  { %2370 = vtanh.f32 %v1110_v17 }
 0x442   :  { %2372 = vrcp.f32 %v1103_v18 }
 0x44e   :  { %v2371_v19 = vpop.eup %2370 }
 0x44f   :  { %v1112_v20 = vsub.f32 %v3068_v60, %v2371_v19  ;;  %v2373_v21 = vpop.eup %2372  ;;  %v3266_v60 = vld [vmem:[#allocation9 + $0x18] sm:$0xff] }
 0x450   :  { %3559 = vst [vmem:[#allocation20_spill] sm:$0xff] %v3266_v60 }
 0x451   :  { %v1113_v23 = vmul.f32 %v2373_v21, %v1112_v20  ;;  %v3304_v20 = vld [vmem:[#allocation9 + $0x148] sm:$0xff]  ;;  %v3310_v21 = vld [vmem:[#allocation9 + $0x130] sm:$0xff] }
 0x453   :  { %v3147_v11 = vadd.f32 %v2371_v19, %v1113_v23  ;;  %v3298_v19 = vld [vmem:[#allocation9 + $0x160] sm:$0xff]  ;;  %v3316_v23 = vld [vmem:[#allocation9 + $0x118] sm:$0xff] }
 0x455   :  { %1116 = vst [vmem:[#allocation10 + $0x18] sm:$0xff] %v3147_v11  ;;  %1188 = vmatmul.mubr.f32.vlgmr.msra.gmra.mxu0 %v3147_v11  ;;  %2217 = vmatmul.mubr.f32.vlgmr.msra.gmra.mxu1 %v3147_v11 }
 0x456   :  { %1294 = vmatpush1.msra.mxu0 %v3152_v24  ;;  %2220 = vmatpush3.msra.mxu1 %v3155_v25 }
 0x457   :  { %1295 = vmatprep.subr.mxu0 %v3158_v44  ;;  %2221 = vmatprep.subr.mxu1 %v3533_v42 }
 0x458   :  { %1296 = vmatpush1.msra.mxu0 %v3162_v0  ;;  %2222 = vmatpush3.msra.mxu1 %v2723_v27  ;;  %v3182_v27 = vld [vmem:[#allocation9 + $0x110] sm:$0xff] }
 0x459   :  { %1297 = vmatprep.subr.mxu0 %v3166_v41  ;;  %2223 = vmatprep.subr.mxu1 %v3533_v42 }
 0x45a   :  { %1298 = vmatpush1.msra.mxu0 %v3170_v43  ;;  %2224 = vmatpush3.msra.mxu1 %v2729_v28  ;;  %v3190_v28 = vld [vmem:[#allocation9 + $0xf8] sm:$0xff] }
 0x45b   :  { %1299 = vmatprep.subr.mxu0 %v3174_v5  ;;  %2225 = vmatprep.subr.mxu1 %v3533_v42 }
 0x45c   :  { %1300 = vmatpush1.msra.mxu0 %v3178_v48  ;;  %2226 = vmatpush3.msra.mxu1 %v2735_v29  ;;  %v3198_v29 = vld [vmem:[#allocation9 + $0xe0] sm:$0xff] }
 0x45d   :  { %1301 = vmatprep.subr.mxu0 %v3182_v27  ;;  %2227 = vmatprep.subr.mxu1 %v3533_v42 }
 0x45e   :  { %1302 = vmatpush1.msra.mxu0 %v3186_v9  ;;  %2228 = vmatpush3.msra.mxu1 %v2740_v30  ;;  %v3206_v30 = vld [vmem:[#allocation9 + $0xc8] sm:$0xff] }
 0x45f   :  { %1303 = vmatprep.subr.mxu0 %v3190_v28  ;;  %2229 = vmatprep.subr.mxu1 %v3533_v42 }
 0x460   :  { %1304 = vmatpush1.msra.mxu0 %v3194_v3  ;;  %2230 = vmatpush3.msra.mxu1 %v2746_v31  ;;  %v3214_v31 = vld [vmem:[#allocation9 + $0xb0] sm:$0xff] }
 0x461   :  { %1305 = vmatprep.subr.mxu0 %v3198_v29  ;;  %2231 = vmatprep.subr.mxu1 %v3533_v42 }
 0x462   :  { %1306 = vmatpush1.msra.mxu0 %v3202_v54  ;;  %2232 = vmatpush3.msra.mxu1 %v2752_v32  ;;  %v3222_v32 = vld [vmem:[#allocation9 + $0x98] sm:$0xff] }
 0x463   :  { %1307 = vmatprep.subr.mxu0 %v3206_v30  ;;  %2233 = vmatprep.subr.mxu1 %v3533_v42 }
 0x464   :  { %1308 = vmatpush1.msra.mxu0 %v3210_v50  ;;  %2234 = vmatpush3.msra.mxu1 %v2756_v33  ;;  %v3230_v33 = vld [vmem:[#allocation9 + $0x80] sm:$0xff] }
 0x465   :  { %1309 = vmatprep.subr.mxu0 %v3214_v31  ;;  %2235 = vmatprep.subr.mxu1 %v3533_v42 }
 0x466   :  { %1310 = vmatpush1.msra.mxu0 %v3218_v62  ;;  %2236 = vmatpush3.msra.mxu1 %v2762_v34  ;;  %v3238_v34 = vld [vmem:[#allocation9 + $0x68] sm:$0xff] }
 0x467   :  { %1311 = vmatprep.subr.mxu0 %v3222_v32  ;;  %2237 = vmatprep.subr.mxu1 %v3533_v42 }
 0x468   :  { %1312 = vmatpush1.msra.mxu0 %v3226_v22  ;;  %2238 = vmatpush3.msra.mxu1 %v2768_v35  ;;  %v3246_v35 = vld [vmem:[#allocation9 + $0x50] sm:$0xff] }
 0x469   :  { %1313 = vmatprep.subr.mxu0 %v3230_v33  ;;  %2239 = vmatprep.subr.mxu1 %v3533_v42 }
 0x46a   :  { %1314 = vmatpush1.msra.mxu0 %v3234_v16  ;;  %2240 = vmatpush3.msra.mxu1 %v2774_v36  ;;  %v3254_v36 = vld [vmem:[#allocation9 + $0x38] sm:$0xff] }
 0x46b   :  { %1315 = vmatprep.subr.mxu0 %v3238_v34  ;;  %2241 = vmatprep.subr.mxu1 %v3533_v42 }
 0x46c   :  { %1316 = vmatpush1.msra.mxu0 %v3242_v26  ;;  %2242 = vmatpush3.msra.mxu1 %v2780_v37  ;;  %v3262_v37 = vld [vmem:[#allocation9 + $0x20] sm:$0xff] }
 0x46d   :  { %1317 = vmatprep.subr.mxu0 %v3246_v35  ;;  %2243 = vmatprep.subr.mxu1 %v3533_v42 }
 0x46e   :  { %1318 = vmatpush1.msra.mxu0 %v3250_v40  ;;  %2244 = vmatpush3.msra.mxu1 %v2786_v38  ;;  %v3270_v38 = vld [vmem:[#allocation9 + $0x8] sm:$0xff] }
 0x46f   :  { %1319 = vmatprep.subr.mxu0 %v3254_v36  ;;  %2245 = vmatprep.subr.mxu1 %v3533_v42  ;;  %3560 = vst [vmem:[#allocation21_spill] sm:$0xff] %v3270_v38 }
 0x470   :  { %1320 = vmatpush1.msra.mxu0 %v3258_v56  ;;  %2246 = vmatpush3.msra.mxu1 %v2792_v39 }
 0x471   :  { %1321 = vmatprep.subr.mxu0 %v3262_v37  ;;  %2247 = vmatprep.subr.mxu1 %v3533_v42 }
 0x472   :  { %1322 = vmatpush1.msra.mxu0 %v3266_v60  ;;  %2248 = vmatpush3.msra.mxu1 %v3552_v47 }
 0x473   :  { %1323 = vmatprep.subr.mxu0 %v3270_v38  ;;  %2249 = vmatprep.subr.mxu1 %v3533_v42 }
 0x474   :  { %1324 = vmatpush1.msra.mxu0 %v3274_v46  ;;  %1357 = vmatprep.mubr.f32.mxu0 %v3533_v42 }
 0x475   :  { %2250 = vmatpush3.msra.mxu1 %v3555_v52  ;;  %2251 = vmatprep.mubr.msk.f32.mxu1 %vm2557_vm0, %v3533_v42 }
 0x476   :  { %1463 = vmatprep.subr.mxu0 %v3138_v53  ;;  %2254 = vmatprep.subr.mxu1 %v3533_v42 }
 0x515   :  { %v1189_v39 = vpop.f32.mrf.mxu0  ;;  %v1260_v47 = vpop.f32.mrf.mxu1 }
 0x516   :  { %v1264_v51 = vadd.f32 %v1189_v39, %v3562_v49  ;;  %v1278_v4 = vadd.f32 %v2911_v45, %v1260_v47  ;;  %v3328_v39 = vld [vmem:[#allocation9 + $0xe8] sm:$0xff]  ;;  %v3334_v47 = vld [vmem:[#allocation9 + $0xd0] sm:$0xff]  ;;  %v3340_v49 = vld [vmem:[#allocation9 + $0xb8] sm:$0xff] }
 0x517   :  { %v2218_v55 = vpop.f32.mrf.mxu1  ;;  %v1191_v58 = vpop.f32.mrf.mxu0 }
 0x518   :  { %v1832_v57 = vmul.f32 -1.442695, %v1264_v51  ;;  %v1265_v61 = vadd.f32 %v1191_v58, %v3563_v59  ;;  %v3346_v51 = vld [vmem:[#allocation9 + $0xa0] sm:$0xff]  ;;  %v3352_v55 = vld [vmem:[#allocation9 + $0x88] sm:$0xff]  ;;  %v3364_v58 = vld [vmem:[#allocation9 + $0x58] sm:$0xff] }
 0x519   :  { %v3370_v59 = vld [vmem:[#allocation9 + $0x40] sm:$0xff] }
 0x51a   :  { %2374 = vpow2.f32 %v1832_v57  ;;  %v1833_v63 = vmul.f32 -1.442695, %v1265_v61  ;;  %v3358_v57 = vld [vmem:[#allocation9 + $0x70] sm:$0xff]  ;;  %v3376_v61 = vld [vmem:[#allocation9 + $0x28] sm:$0xff] }
 0x51b   :  { %3565 = vst [vmem:[#allocation14_spill] sm:$0xff] %v3376_v61 }
 0x51c   :  { %2376 = vpow2.f32 %v1833_v63  ;;  %v3383_v63 = vld [vmem:[#allocation9 + $0x10] sm:$0xff] }
 0x51d   :  { %3566 = vst [vmem:[#allocation22_spill] sm:$0xff] %v3383_v63 }
 0x527   :  { %v2375_v1 = vpop.eup %2374 }
 0x528   :  { %v1272_v52 = vadd.f32 1.0, %v2375_v1 }
 0x529   :  { %v2377_v2 = vpop.eup %2376 }
 0x52a   :  { %2378 = vrcp.f32 %v1272_v52  ;;  %v1273_v12 = vadd.f32 1.0, %v2377_v2  ;;  %v3567_v2 = vld [vmem:[#allocation28_spill] sm:$0xff] }
 0x537   :  { %v2379_v6 = vpop.eup %2378 }
 0x538   :  { %v1279_v7 = vmul.f32 %v2379_v6, %v1278_v4 }
 0x53a   :  { %v1280_v10 = vadd.f32 %v1279_v7, %v3564_v8 }
 0x53c   :  { %2380 = vtanh.f32 %v1280_v10  ;;  %v3568_v10 = vld [vmem:[#allocation29_spill] sm:$0xff] }
 0x53d   :  { %2382 = vrcp.f32 %v1273_v12 }
 0x549   :  { %v2381_v13 = vpop.eup %2380 }
 0x54a   :  { %v1282_v14 = vsub.f32 %v3147_v11, %v2381_v13  ;;  %v2383_v15 = vpop.eup %2382  ;;  %v3322_v11 = vld [vmem:[#allocation9 + $0x100] sm:$0xff] }
 0x54c   :  { %v1283_v17 = vmul.f32 %v2383_v15, %v1282_v14 }
 0x54e   :  { %v3288_v18 = vadd.f32 %v2381_v13, %v1283_v17 }
 0x550   :  { %1286 = vst [vmem:[#allocation10 + $0x20] sm:$0xff] %v3288_v18  ;;  %1358 = vmatmul.mubr.f32.vlgmr.msra.gmra.mxu0 %v3288_v18  ;;  %2252 = vmatmul.mubr.f32.vlgmr.msra.gmra.mxu1 %v3288_v18 }
 0x551   :  { %1464 = vmatpush1.msra.mxu0 %v3152_v24  ;;  %2255 = vmatpush3.msra.mxu1 %v3155_v25 }
 0x552   :  { %1465 = vmatprep.subr.mxu0 %v3158_v44  ;;  %2256 = vmatprep.subr.mxu1 %v3533_v42 }
 0x553   :  { %1466 = vmatpush1.msra.mxu0 %v3162_v0  ;;  %2257 = vmatpush3.msra.mxu1 %v3298_v19 }
 0x554   :  { %1467 = vmatprep.subr.mxu0 %v3166_v41  ;;  %2258 = vmatprep.subr.mxu1 %v3533_v42 }
 0x555   :  { %1468 = vmatpush1.msra.mxu0 %v3170_v43  ;;  %2259 = vmatpush3.msra.mxu1 %v3304_v20 }
 0x556   :  { %1469 = vmatprep.subr.mxu0 %v3174_v5  ;;  %2260 = vmatprep.subr.mxu1 %v3533_v42 }
 0x557   :  { %1470 = vmatpush1.msra.mxu0 %v3178_v48  ;;  %2261 = vmatpush3.msra.mxu1 %v3310_v21 }
 0x558   :  { %1471 = vmatprep.subr.mxu0 %v3182_v27  ;;  %2262 = vmatprep.subr.mxu1 %v3533_v42 }
 0x559   :  { %1472 = vmatpush1.msra.mxu0 %v3186_v9  ;;  %2263 = vmatpush3.msra.mxu1 %v3316_v23 }
 0x55a   :  { %1473 = vmatprep.subr.mxu0 %v3190_v28  ;;  %2264 = vmatprep.subr.mxu1 %v3533_v42 }
 0x55b   :  { %1474 = vmatpush1.msra.mxu0 %v3194_v3  ;;  %2265 = vmatpush3.msra.mxu1 %v3322_v11 }
 0x55c   :  { %1475 = vmatprep.subr.mxu0 %v3198_v29  ;;  %2266 = vmatprep.subr.mxu1 %v3533_v42 }
 0x55d   :  { %1476 = vmatpush1.msra.mxu0 %v3202_v54  ;;  %2267 = vmatpush3.msra.mxu1 %v3328_v39 }
 0x55e   :  { %1477 = vmatprep.subr.mxu0 %v3206_v30  ;;  %2268 = vmatprep.subr.mxu1 %v3533_v42 }
 0x55f   :  { %1478 = vmatpush1.msra.mxu0 %v3210_v50  ;;  %2269 = vmatpush3.msra.mxu1 %v3334_v47 }
 0x560   :  { %1479 = vmatprep.subr.mxu0 %v3214_v31  ;;  %2270 = vmatprep.subr.mxu1 %v3533_v42 }
 0x561   :  { %1480 = vmatpush1.msra.mxu0 %v3218_v62  ;;  %2271 = vmatpush3.msra.mxu1 %v3340_v49 }
 0x562   :  { %1481 = vmatprep.subr.mxu0 %v3222_v32  ;;  %2272 = vmatprep.subr.mxu1 %v3533_v42 }
 0x563   :  { %1482 = vmatpush1.msra.mxu0 %v3226_v22  ;;  %2273 = vmatpush3.msra.mxu1 %v3346_v51 }
 0x564   :  { %1483 = vmatprep.subr.mxu0 %v3230_v33  ;;  %2274 = vmatprep.subr.mxu1 %v3533_v42 }
 0x565   :  { %1484 = vmatpush1.msra.mxu0 %v3234_v16  ;;  %2275 = vmatpush3.msra.mxu1 %v3352_v55 }
 0x566   :  { %1485 = vmatprep.subr.mxu0 %v3238_v34  ;;  %2276 = vmatprep.subr.mxu1 %v3533_v42 }
 0x567   :  { %1486 = vmatpush1.msra.mxu0 %v3242_v26  ;;  %2277 = vmatpush3.msra.mxu1 %v3358_v57 }
 0x568   :  { %1487 = vmatprep.subr.mxu0 %v3246_v35  ;;  %2278 = vmatprep.subr.mxu1 %v3533_v42 }
 0x569   :  { %1488 = vmatpush1.msra.mxu0 %v3250_v40  ;;  %2279 = vmatpush3.msra.mxu1 %v3364_v58 }
 0x56a   :  { %1489 = vmatprep.subr.mxu0 %v3254_v36  ;;  %2280 = vmatprep.subr.mxu1 %v3533_v42 }
 0x56b   :  { %1490 = vmatpush1.msra.mxu0 %v3258_v56  ;;  %2281 = vmatpush3.msra.mxu1 %v3370_v59 }
 0x56c   :  { %1491 = vmatprep.subr.mxu0 %v3262_v37  ;;  %2282 = vmatprep.subr.mxu1 %v3533_v42 }
 0x56d   :  { %1492 = vmatpush1.msra.mxu0 %v3266_v60  ;;  %2283 = vmatpush3.msra.mxu1 %v3376_v61 }
 0x56e   :  { %1493 = vmatprep.subr.mxu0 %v3270_v38  ;;  %2284 = vmatprep.subr.mxu1 %v3533_v42  ;;  %v3569_v38 = vld [vmem:[#allocation37_spill] sm:$0xff] }
 0x56f   :  { %1494 = vmatpush1.msra.mxu0 %v3274_v46  ;;  %1527 = vmatprep.mubr.f32.mxu0 %v3533_v42 }
 0x570   :  { %2285 = vmatpush3.msra.mxu1 %v3383_v63  ;;  %2286 = vmatprep.mubr.msk.f32.mxu1 %vm2557_vm0, %v3533_v42 }
 0x571   :  { %1633 = vmatprep.subr.mxu0 %v3138_v53  ;;  %2289 = vmatprep.subr.mxu1 %v3533_v42 }
 0x610   :  { %v1359_v1 = vpop.f32.mrf.mxu0  ;;  %v1430_v52 = vpop.f32.mrf.mxu1 }
 0x611   :  { %v1434_v4 = vadd.f32 %v1359_v1, %v3567_v2  ;;  %v1448_v53 = vadd.f32 %v2911_v45, %v1430_v52  ;;  %v3570_v45 = vld [vmem:[#allocation20_spill] sm:$0xff] }
 0x612   :  { %v2253_v6 = vpop.f32.mrf.mxu1  ;;  %v1361_v8 = vpop.f32.mrf.mxu0 }
 0x613   :  { %v1834_v7 = vmul.f32 -1.442695, %v1434_v4  ;;  %v1435_v12 = vadd.f32 %v1361_v8, %v3568_v10 }
 0x615   :  { %2384 = vpow2.f32 %v1834_v7  ;;  %v1835_v13 = vmul.f32 -1.442695, %v1435_v12 }
 0x617   :  { %2386 = vpow2.f32 %v1835_v13 }
 0x622   :  { %v2385_v14 = vpop.eup %2384 }
 0x623   :  { %v1442_v15 = vadd.f32 1.0, %v2385_v14 }
 0x624   :  { %v2387_v17 = vpop.eup %2386 }
 0x625   :  { %2388 = vrcp.f32 %v1442_v15  ;;  %v1443_v60 = vadd.f32 1.0, %v2387_v17 }
 0x632   :  { %v2389_v63 = vpop.eup %2388 }
 0x633   :  { %v1449_v46 = vmul.f32 %v2389_v63, %v1448_v53 }
 0x635   :  { %v1450_v61 = vadd.f32 %v1449_v46, %v3569_v38  ;;  %v3578_v38 = vld [vmem:[#allocation33_spill] sm:$0xff] }
 0x637   :  { %2390 = vtanh.f32 %v1450_v61 }
 0x638   :  { %2392 = vrcp.f32 %v1443_v60 }
 0x644   :  { %v2391_v1 = vpop.eup %2390 }
 0x645   :  { %v1452_v2 = vsub.f32 %v3288_v18, %v2391_v1  ;;  %v2393_v4 = vpop.eup %2392 }
 0x647   :  { %v1453_v6 = vmul.f32 %v2393_v4, %v1452_v2 }
 0x649   :  { %v3395_v7 = vadd.f32 %v2391_v1, %v1453_v6 }
 0x64b   :  { %1456 = vst [vmem:[#allocation10 + $0x28] sm:$0xff] %v3395_v7  ;;  %1528 = vmatmul.mubr.f32.vlgmr.msra.gmra.mxu0 %v3395_v7  ;;  %2287 = vmatmul.mubr.f32.vlgmr.msra.gmra.mxu1 %v3395_v7 }
 0x64c   :  { %1634 = vmatpush1.msra.mxu0 %v3152_v24  ;;  %2290 = vmatpush3.msra.mxu1 %v3155_v25  ;;  %v3571_v24 = vld [vmem:[#allocation14_spill] sm:$0xff]  ;;  %v3572_v25 = vld [vmem:[#allocation21_spill] sm:$0xff] }
 0x64d   :  { %1635 = vmatprep.subr.mxu0 %v3158_v44  ;;  %2291 = vmatprep.subr.mxu1 %v3533_v42  ;;  %v3573_v44 = vld [vmem:[#allocation32_spill] sm:$0xff] }
 0x64e   :  { %1636 = vmatpush1.msra.mxu0 %v3162_v0  ;;  %2292 = vmatpush3.msra.mxu1 %v3298_v19  ;;  %v3574_v0 = vld [vmem:[#allocation22_spill] sm:$0xff] }
 0x64f   :  { %1637 = vmatprep.subr.mxu0 %v3166_v41  ;;  %2293 = vmatprep.subr.mxu1 %v3533_v42 }
 0x650   :  { %1638 = vmatpush1.msra.mxu0 %v3170_v43  ;;  %2294 = vmatpush3.msra.mxu1 %v3304_v20 }
 0x651   :  { %1639 = vmatprep.subr.mxu0 %v3174_v5  ;;  %2295 = vmatprep.subr.mxu1 %v3533_v42  ;;  %v3575_v5 = vld [vmem:[#allocation30_spill] sm:$0xff] }
 0x652   :  { %1640 = vmatpush1.msra.mxu0 %v3178_v48  ;;  %2296 = vmatpush3.msra.mxu1 %v3310_v21  ;;  %v3579_v21 = vld [vmem:[#allocation34_spill] sm:$0xff] }
 0x653   :  { %1641 = vmatprep.subr.mxu0 %v3182_v27  ;;  %2297 = vmatprep.subr.mxu1 %v3533_v42 }
 0x654   :  { %1642 = vmatpush1.msra.mxu0 %v3186_v9  ;;  %2298 = vmatpush3.msra.mxu1 %v3316_v23 }
 0x655   :  { %1643 = vmatprep.subr.mxu0 %v3190_v28  ;;  %2299 = vmatprep.subr.mxu1 %v3533_v42 }
 0x656   :  { %1644 = vmatpush1.msra.mxu0 %v3194_v3  ;;  %2300 = vmatpush3.msra.mxu1 %v3322_v11  ;;  %v3576_v3 = vld [vmem:[#allocation31_spill] sm:$0xff] }
 0x657   :  { %1645 = vmatprep.subr.mxu0 %v3198_v29  ;;  %2301 = vmatprep.subr.mxu1 %v3533_v42 }
 0x658   :  { %1646 = vmatpush1.msra.mxu0 %v3202_v54  ;;  %2302 = vmatpush3.msra.mxu1 %v3328_v39 }
 0x659   :  { %1647 = vmatprep.subr.mxu0 %v3206_v30  ;;  %2303 = vmatprep.subr.mxu1 %v3533_v42 }
 0x65a   :  { %1648 = vmatpush1.msra.mxu0 %v3210_v50  ;;  %2304 = vmatpush3.msra.mxu1 %v3334_v47 }
 0x65b   :  { %1649 = vmatprep.subr.mxu0 %v3214_v31  ;;  %2305 = vmatprep.subr.mxu1 %v3533_v42 }
 0x65c   :  { %1650 = vmatpush1.msra.mxu0 %v3218_v62  ;;  %2306 = vmatpush3.msra.mxu1 %v3340_v49 }
 0x65d   :  { %1651 = vmatprep.subr.mxu0 %v3222_v32  ;;  %2307 = vmatprep.subr.mxu1 %v3533_v42 }
 0x65e   :  { %1652 = vmatpush1.msra.mxu0 %v3226_v22  ;;  %2308 = vmatpush3.msra.mxu1 %v3346_v51 }
 0x65f   :  { %1653 = vmatprep.subr.mxu0 %v3230_v33  ;;  %2309 = vmatprep.subr.mxu1 %v3533_v42  ;;  %v3577_v33 = vld [vmem:[#allocation40_spill] sm:$0xff] }
 0x660   :  { %1654 = vmatpush1.msra.mxu0 %v3234_v16  ;;  %2310 = vmatpush3.msra.mxu1 %v3352_v55 }
 0x661   :  { %1655 = vmatprep.subr.mxu0 %v3238_v34  ;;  %2311 = vmatprep.subr.mxu1 %v3533_v42 }
 0x662   :  { %1656 = vmatpush1.msra.mxu0 %v3242_v26  ;;  %2312 = vmatpush3.msra.mxu1 %v3358_v57 }
 0x663   :  { %1657 = vmatprep.subr.mxu0 %v3246_v35  ;;  %2313 = vmatprep.subr.mxu1 %v3533_v42 }
 0x664   :  { %1658 = vmatpush1.msra.mxu0 %v3250_v40  ;;  %2314 = vmatpush3.msra.mxu1 %v3364_v58  ;;  %v3580_v58 = vld [vmem:[#allocation39_spill] sm:$0xff] }
 0x665   :  { %1659 = vmatprep.subr.mxu0 %v3254_v36  ;;  %2315 = vmatprep.subr.mxu1 %v3533_v42 }
 0x666   :  { %1660 = vmatpush1.msra.mxu0 %v3258_v56  ;;  %2316 = vmatpush3.msra.mxu1 %v3370_v59 }
 0x667   :  { %1661 = vmatprep.subr.mxu0 %v3262_v37  ;;  %2317 = vmatprep.subr.mxu1 %v3533_v42 }
 0x668   :  { %1662 = vmatpush1.msra.mxu0 %v3570_v45  ;;  %2318 = vmatpush3.msra.mxu1 %v3571_v24 }
 0x669   :  { %1663 = vmatprep.subr.mxu0 %v3572_v25  ;;  %2319 = vmatprep.subr.mxu1 %v3533_v42 }
 0x66a   :  { %1664 = vmatpush1.msra.mxu0 %v3573_v44  ;;  %1697 = vmatprep.mubr.f32.mxu0 %v3533_v42 }
 0x66b   :  { %2320 = vmatpush3.msra.mxu1 %v3574_v0  ;;  %2321 = vmatprep.mubr.msk.f32.mxu1 %vm2557_vm0, %v3533_v42  ;;  %v2462_v42 = vld [vmem:[%s3485_s4] ss:$0 sm:$0xff]  ;;  %s2558_s4 = smov [#allocation10]  }
 0x66c   :  { %s1803_s14 = sshll.u32 %s2558_s4, 4  ;;  %s1804_s14 = int_to_ptr.vmem [resolvable:$true] %s1803_s14 }
 0x66d   :  { %s2523_s15 = scalar_lea.vmem %s1804_s14, 1024  ;;  %p2528_p2 = scmp.lt.s32.totalorder %s1804_s14, %s1804_s14 }
 0x66e   :  { %p2524_p1 = scmp.ne.s32.totalorder %s1804_s14, %s2523_s15  ;;  %p2529_p3 = scmp.lt.s32.totalorder %s2523_s15, %s2523_s15 }
 0x670   :  { %p2530_p4 = por %p2529_p3, %p2528_p2 }
 0x672   :  { %p2531_p5 = pnand %p2530_p4, %p2524_p1 }
 0x70b   :  { %v1529_v41 = vpop.f32.mrf.mxu0  ;;  %v1600_v43 = vpop.f32.mrf.mxu1 }
 0x70c   :  { %v1604_v48 = vadd.f32 %v1529_v41, %v3575_v5  ;;  %v1618_v62 = vadd.f32 %v2462_v42, %v1600_v43 }
 0x70d   :  { %v2288_v27 = vpop.f32.mrf.mxu1  ;;  %v1531_v28 = vpop.f32.mrf.mxu0 }
 0x70e   :  { %v1836_v9 = vmul.f32 -1.442695, %v1604_v48  ;;  %v1605_v29 = vadd.f32 %v1531_v28, %v3576_v3 }
 0x710   :  { %2394 = vpow2.f32 %v1836_v9  ;;  %v1837_v54 = vmul.f32 -1.442695, %v1605_v29 }
 0x712   :  { %2396 = vpow2.f32 %v1837_v54 }
 0x71d   :  { %v2395_v30 = vpop.eup %2394 }
 0x71e   :  { %v1612_v50 = vadd.f32 1.0, %v2395_v30 }
 0x71f   :  { %v2397_v31 = vpop.eup %2396 }
 0x720   :  { %2398 = vrcp.f32 %v1612_v50  ;;  %v1613_v34 = vadd.f32 1.0, %v2397_v31 }
 0x72d   :  { %v2399_v32 = vpop.eup %2398 }
 0x72e   :  { %v1619_v22 = vmul.f32 %v2399_v32, %v1618_v62 }
 0x730   :  { %v1620_v16 = vadd.f32 %v1619_v22, %v3577_v33 }
 0x732   :  { %2400 = vtanh.f32 %v1620_v16 }
 0x733   :  { %2402 = vrcp.f32 %v1613_v34 }
 0x73f   :  { %v2401_v26 = vpop.eup %2400 }
 0x740   :  { %v1622_v35 = vsub.f32 %v3395_v7, %v2401_v26  ;;  %v2403_v40 = vpop.eup %2402 }
 0x742   :  { %v1623_v36 = vmul.f32 %v2403_v40, %v1622_v35 }
 0x744   :  { %v1624_v56 = vadd.f32 %v2401_v26, %v1623_v36 }
 0x746   :  { %1626 = vst [vmem:[#allocation10 + $0x30] sm:$0xff] %v1624_v56  ;;  %1698 = vmatmul.mubr.f32.vlgmr.msra.gmra.mxu0 %v1624_v56  ;;  %2322 = vmatmul.mubr.f32.vlgmr.msra.gmra.mxu1 %v1624_v56 }
 0x806   :  { %v1699_v37 = vpop.f32.mrf.mxu0  ;;  %v1770_v60 = vpop.f32.mrf.mxu1 }
 0x807   :  { %v1774_v46 = vadd.f32 %v1699_v37, %v3578_v38  ;;  %v1788_v51 = vadd.f32 %v2462_v42, %v1770_v60 }
 0x808   :  { %v2323_v18 = vpop.f32.mrf.mxu1  ;;  %v1701_v20 = vpop.f32.mrf.mxu0 }
 0x809   :  { %v1838_v19 = vmul.f32 -1.442695, %v1774_v46  ;;  %v1775_v23 = vadd.f32 %v1701_v20, %v3579_v21 }
 0x80b   :  { %2404 = vpow2.f32 %v1838_v19  ;;  %v1839_v11 = vmul.f32 -1.442695, %v1775_v23 }
 0x80d   :  { %2406 = vpow2.f32 %v1839_v11 }
 0x818   :  { %v2405_v39 = vpop.eup %2404 }
 0x819   :  { %v1782_v47 = vadd.f32 1.0, %v2405_v39 }
 0x81a   :  { %v2407_v49 = vpop.eup %2406 }
 0x81b   :  { %2408 = vrcp.f32 %v1782_v47  ;;  %v1783_v61 = vadd.f32 1.0, %v2407_v49 }
 0x828   :  { %v2409_v55 = vpop.eup %2408 }
 0x829   :  { %v1789_v57 = vmul.f32 %v2409_v55, %v1788_v51 }
 0x82b   :  { %v1790_v59 = vadd.f32 %v1789_v57, %v3580_v58 }
 0x82d   :  { %2410 = vtanh.f32 %v1790_v59 }
 0x82e   :  { %2412 = vrcp.f32 %v1783_v61 }
 0x83a   :  { %v2411_v63 = vpop.eup %2410 }
 0x83b   :  { %v1792_v52 = vsub.f32 %v1624_v56, %v2411_v63  ;;  %v2413_v8 = vpop.eup %2412 }
 0x83d   :  { %v1793_v10 = vmul.f32 %v2413_v8, %v1792_v52 }
 0x83f   :  { %v1794_v12 = vadd.f32 %v2411_v63, %v1793_v10 }
 0x841   :  { %1796 = vst [vmem:[#allocation10 + $0x38] sm:$0xff] %v1794_v12 }
 0x842   :  { %2534 = shalt.err (!%p2531_p5)
}
 0x843   :  { %1809 = dma.vmem_to_hbm [thread:$0]  %s1804_s14, 1024, %s3486_s5, [#allocation6], %s2553_s28, %s2553_s28, %s2554_s29  }
 0x844   :  { %2547 = dma.done.wait [#allocation6], 1024  }
 0x845   :  { %2548 = vsyncadd [#allocation6], 4294966272 }
 0x846   :  { %1813 = vsyncpa [#allocation5], 1 }
 0x847   :  { %1814 = vsyncpa [#allocation8], 1 }
 0x848   :  { %1815 = vsyncpa [#allocation6], 1 }

</bundles_post_ra>
